<compile_context>
chip_gen: v7x
topology: tpu7x:2x2x1
jax: 0.10.0
libtpu: 0.0.40
codegen_flags: <defaults>
</compile_context>

<pallas_src>
import numpy as np
import jax
import jax.numpy as jnp
from jax.experimental import pallas as pl
from jax.experimental.pallas import tpu as pltpu


# ----------------------------------------------------------------------------
# Fused kernel body: block-diag trunk + grouped LayerNorm + Mobius Choquet
# ----------------------------------------------------------------------------
def _critic_kernel(obs_ref, act_ref, w1o_ref, w1a_ref, b1_ref, mln_ref,
                   w2_ref, b2_ref, gi_ref, gj_ref, cs_ref, cp_ref, out_ref):
    f32 = jnp.float32
    bf16 = jnp.bfloat16

    # ---- layer 1 (block-diagonal over nodes; absorbs the obs/act concat) ----
    obs = obs_ref[...].astype(bf16)                              # (TB, N*H)
    act = act_ref[...].astype(bf16)
    h = (jnp.dot(obs, w1o_ref[...], preferred_element_type=f32)
         + jnp.dot(act, w1a_ref[...], preferred_element_type=f32)
         + b1_ref[...])                                          # (TB, N*2H) f32

    # ---- grouped LayerNorm via averaging matmul (no XLU lane reduces) ----
    mln = mln_ref[...]                                           # (N*2H, N*2H) f32
    mean = jnp.dot(h, mln, preferred_element_type=f32)           # per-group mean
    ex2 = jnp.dot(h * h, mln, preferred_element_type=f32)        # independent of mean
    var = jnp.maximum(ex2 - mean * mean, 0.0)
    hn = (h - mean) * jax.lax.rsqrt(var + 1e-5)                  # rsqrt -> EUP slot
    h2 = jnp.maximum(hn, 0.0).astype(bf16)                       # ReLU

    # ---- layer 2 (block-diagonal; lanes = [V_n | Q_n] per node, Q = A + V) ----
    vq = (jnp.dot(h2, w2_ref[...], preferred_element_type=f32)
          + b2_ref[...])                                         # (TB, N*2D) f32

    # ---- Mobius Choquet heads, fully as matmuls ----
    left = jnp.dot(vq, gi_ref[...], preferred_element_type=f32)  # (TB, P*2D)
    right = jnp.dot(vq, gj_ref[...], preferred_element_type=f32)
    mins = jnp.minimum(left, right)
    out = (jnp.dot(vq, cs_ref[...], preferred_element_type=f32)
           + jnp.dot(mins, cp_ref[...], preferred_element_type=f32))  # (TB, 2A)

    out_ref[...] = out


# ----------------------------------------------------------------------------
# Wrapper: padded batch tiling + one fused pallas_call
# ----------------------------------------------------------------------------
def _round_up(x, m):
    return ((x + m - 1) // m) * m


def _choose_batch_tile(B):
    """>=2 grid steps whenever the batch allows it (feeds both v7x TensorCores via
    the 'parallel' axis), capped at 512 rows/step, always a multiple of 8 sublanes."""
    if B <= 8:
        tb = _round_up(max(B, 1), 8)
    else:
        tb = min(512, _round_up((B + 1) // 2, 8))
    bp = _round_up(B, tb)
    return tb, bp // tb, bp


def critic_forward(params, observation, action):
    """observation, action: (B, N, H) float32. Returns (ChI_Q, ChI_V), each (B, A)."""
    assert observation.shape == action.shape
    B, N, H = observation.shape
    n_agents = params["cs"].shape[1] // 2
    F1 = N * H

    # contiguous trailing-dim merge: effectively free, no extra HBM repack pass
    obs = observation.reshape(B, F1)
    act = action.reshape(B, F1)

    TB, nb, Bp = _choose_batch_tile(B)
    if Bp != B:
        pad = ((0, Bp - B), (0, 0))
        obs = jnp.pad(obs, pad)
        act = jnp.pad(act, pad)

    def _full(arr):
        return pl.BlockSpec(arr.shape, lambda b, _nd=arr.ndim: (0,) * _nd)

    w = params
    out = pl.pallas_call(
        _critic_kernel,
        out_shape=jax.ShapeDtypeStruct((Bp, 2 * n_agents), jnp.float32),
        grid_spec=pltpu.PrefetchScalarGridSpec(
            num_scalar_prefetch=0,
            grid=(nb,),
            in_specs=[
                pl.BlockSpec((TB, F1), lambda b: (b, 0)),
                pl.BlockSpec((TB, F1), lambda b: (b, 0)),
                _full(w["w1o"]), _full(w["w1a"]), _full(w["b1"]), _full(w["mln"]),
                _full(w["w2"]), _full(w["b2"]),
                _full(w["gi"]), _full(w["gj"]), _full(w["cs"]), _full(w["cp"]),
            ],
            out_specs=pl.BlockSpec((TB, 2 * n_agents), lambda b: (b, 0)),
        ),
        # ~1 MB weights + <1 MB activation tile: far below scoped VMEM defaults on
        # v5e / v6e / v7x, no vmem_limit_bytes override needed.
        compiler_params=pltpu.CompilerParams(dimension_semantics=("parallel",)),
    )(obs, act, w["w1o"], w["w1a"], w["b1"], w["mln"],
      w["w2"], w["b2"], w["gi"], w["gj"], w["cs"], w["cp"])

    out = out[:B]
    return out[:, :n_agents], out[:, n_agents:]


# ----------------------------------------------------------------------------
# Deterministic synthetic parameters (raw, PyTorch-like layout)
# ----------------------------------------------------------------------------
def init_raw_params(key, hidden_nums, output_nums, node_nums, neighbor_nums, heads):
    H, D, N = hidden_nums, output_nums, node_nums
    ks = jax.random.split(key, 6)
    s = 0.1
    raw = {
        "wv1": jax.random.normal(ks[0], (N, H, H), jnp.float32) * s,
        "bv1": jnp.zeros((N, H), jnp.float32),
        "wv2": jax.random.normal(ks[1], (N, H, D), jnp.float32) * s,
        "bv2": jnp.zeros((N, D), jnp.float32),
        "wa1": jax.random.normal(ks[2], (N, 2 * H, H), jnp.float32) * s,
        "ba1": jnp.zeros((N, H), jnp.float32),
        "wa2": jax.random.normal(ks[3], (N, H, D), jnp.float32) * s,
        "ba2": jnp.zeros((N, D), jnp.float32),
    }
    # Mobius weights pre-averaged over heads (forward_mobius is linear in them).
    n_agents = len(neighbor_nums)
    max_n = max(nns - 1 for nns in neighbor_nums)
    ws = np.zeros((n_agents, max_n), np.float32)
    wp = np.zeros((n_agents, max_n, max_n), np.float32)
    for a, nns in enumerate(neighbor_nums):
        n_a = nns - 1
        ka = jax.random.fold_in(ks[4], a)
        k1, k2 = jax.random.split(ka)
        ws_a = (jnp.full((heads, n_a), 1.0 / n_a)
                + 0.05 * jax.random.normal(k1, (heads, n_a)))
        wp_a = 0.05 * jax.random.normal(k2, (heads, n_a, n_a))
        ws[a, :n_a] = np.asarray(jnp.mean(ws_a, axis=0))
        wp[a, :n_a, :n_a] = np.asarray(jnp.mean(wp_a, axis=0))
    raw["ws"] = jnp.asarray(ws)
    raw["wp"] = jnp.asarray(wp)
    return raw


# ----------------------------------------------------------------------------
# Pack raw per-node / per-agent weights into the kernel's constant matrices
# ----------------------------------------------------------------------------
def pack_params(raw, local_edges, hidden_nums, output_nums):
    H, D = hidden_nums, output_nums
    wv1, bv1 = np.asarray(raw["wv1"]), np.asarray(raw["bv1"])
    wv2, bv2 = np.asarray(raw["wv2"]), np.asarray(raw["bv2"])
    wa1, ba1 = np.asarray(raw["wa1"]), np.asarray(raw["ba1"])
    wa2, ba2 = np.asarray(raw["wa2"]), np.asarray(raw["ba2"])
    ws, wp = np.asarray(raw["ws"]), np.asarray(raw["wp"])
    N = wv1.shape[0]
    n_agents = len(local_edges)
    F1, F2, F3 = N * H, N * 2 * H, N * 2 * D

    w1o = np.zeros((F1, F2), np.float32)   # obs -> [hv_pre | ha_pre] per node
    w1a = np.zeros((F1, F2), np.float32)   # act -> [   0   | ha_pre] per node
    b1 = np.zeros((1, F2), np.float32)
    mln = np.zeros((F2, F2), np.float32)   # per half-node group averaging matrix
    w2 = np.zeros((F2, F3), np.float32)    # [hv | ha] -> [V | Q] per node (Q = A + V)
    b2 = np.zeros((1, F3), np.float32)
    for n in range(N):
        r = slice(n * H, (n + 1) * H)
        cv = slice(n * 2 * H, n * 2 * H + H)          # hv lanes of node n
        ca = slice(n * 2 * H + H, (n + 1) * 2 * H)    # ha lanes of node n
        oV = slice(n * 2 * D, n * 2 * D + D)          # V lanes of node n
        oQ = slice(n * 2 * D + D, (n + 1) * 2 * D)    # Q lanes of node n
        w1o[r, cv] = wv1[n]
        w1o[r, ca] = wa1[n, :H, :]
        w1a[r, ca] = wa1[n, H:, :]
        b1[0, cv] = bv1[n]
        b1[0, ca] = ba1[n]
        mln[cv, cv] = 1.0 / H
        mln[ca, ca] = 1.0 / H
        w2[cv, oV] = wv2[n]
        w2[cv, oQ] = wv2[n]
        w2[ca, oQ] = wa2[n]
        b2[0, oV] = bv2[n]
        b2[0, oQ] = bv2[n] + ba2[n]

    # ---- Choquet coefficient tables (static edge structure baked in) ----
    edges = [(int(e[0, 0]), [int(v) for v in e[0, 1:]]) for e in local_edges]
    cs = np.zeros((F3, 2 * n_agents), np.float32)
    pair_coeff = {}                        # global (p<q) node pair -> per-agent coeff

    def _add_singleton(node, a, coeff):
        cs[node * 2 * D + D:(node + 1) * 2 * D, a] += coeff / D           # Q -> ChI_Q
        cs[node * 2 * D:node * 2 * D + D, n_agents + a] += coeff / D      # V -> ChI_V

    for a, (self_idx, nbrs) in enumerate(edges):
        _add_singleton(self_idx, a, 1.0)                                   # "+ self" term
        for j, node in enumerate(nbrs):
            _add_singleton(node, a, float(ws[a, j] + wp[a, j, j]))         # singleton + diag
        for i in range(len(nbrs)):
            for j in range(i + 1, len(nbrs)):
                c = float(wp[a, i, j] + wp[a, j, i])                       # min() symmetry fold
                p, q = nbrs[i], nbrs[j]
                if p == q:                                                 # degenerate dup
                    _add_singleton(p, a, c)
                    continue
                key = (min(p, q), max(p, q))
                pair_coeff.setdefault(key, np.zeros(n_agents, np.float32))[a] += c

    pairs = sorted(pair_coeff)
    if not pairs:                                                          # keep shapes valid
        pairs, pair_coeff = [(0, 0)], {(0, 0): np.zeros(n_agents, np.float32)}
    P = len(pairs)
    gi = np.zeros((F3, P * 2 * D), np.float32)
    gj = np.zeros((F3, P * 2 * D), np.float32)
    cp = np.zeros((P * 2 * D, 2 * n_agents), np.float32)
    eye = np.eye(2 * D, dtype=np.float32)
    for k, (p, q) in enumerate(pairs):
        kc = slice(k * 2 * D, (k + 1) * 2 * D)
        gi[p * 2 * D:(p + 1) * 2 * D, kc] = eye                            # left  = node p
        gj[q * 2 * D:(q + 1) * 2 * D, kc] = eye                            # right = node q
        coeff = pair_coeff[(p, q)]
        for a in range(n_agents):
            cp[k * 2 * D + D:(k + 1) * 2 * D, a] = coeff[a] / D            # Q pairs -> ChI_Q
            cp[k * 2 * D:k * 2 * D + D, n_agents + a] = coeff[a] / D       # V pairs -> ChI_V

    return {
        "w1o": jnp.asarray(w1o, jnp.bfloat16),
        "w1a": jnp.asarray(w1a, jnp.bfloat16),
        "b1": jnp.asarray(b1),
        "mln": jnp.asarray(mln),
        "w2": jnp.asarray(w2, jnp.bfloat16),
        "b2": jnp.asarray(b2),
        "gi": jnp.asarray(gi),
        "gj": jnp.asarray(gj),
        "cs": jnp.asarray(cs),
        "cp": jnp.asarray(cp),
    }


# ----------------------------------------------------------------------------
# Pure-JAX f32 reference of the same (assumed) forward semantics
# ----------------------------------------------------------------------------
def critic_reference(raw, observation, action, local_edges):
    def ln(h):
        mu = jnp.mean(h, axis=-1, keepdims=True)
        var = jnp.mean((h - mu) ** 2, axis=-1, keepdims=True)
        return (h - mu) * jax.lax.rsqrt(var + 1e-5)

    xa = jnp.concatenate([observation, action], axis=-1)
    hv = jnp.maximum(ln(jnp.einsum("bnh,nhk->bnk", observation, raw["wv1"]) + raw["bv1"]), 0.0)
    ha = jnp.maximum(ln(jnp.einsum("bnh,nhk->bnk", xa, raw["wa1"]) + raw["ba1"]), 0.0)
    V = jnp.einsum("bnh,nhd->bnd", hv, raw["wv2"]) + raw["bv2"]
    Q = V + jnp.einsum("bnh,nhd->bnd", ha, raw["wa2"]) + raw["ba2"]

    ws, wp = raw["ws"], raw["wp"]
    chi_q, chi_v = [], []
    for a, e in enumerate(local_edges):
        self_idx = int(e[0, 0])
        nbrs = jnp.asarray([int(v) for v in e[0, 1:]])
        n_a = int(nbrs.shape[0])

        def chi(x, a=a, self_idx=self_idx, nbrs=nbrs, n_a=n_a):
            vals = x[:, nbrs, :]                                        # (B, n_a, D)
            single = jnp.einsum("j,bjd->bd", ws[a, :n_a], vals)
            mins = jnp.minimum(vals[:, :, None, :], vals[:, None, :, :])
            pair = jnp.einsum("ij,bijd->bd", wp[a, :n_a, :n_a], mins)
            return jnp.mean(single + pair + x[:, self_idx, :], axis=-1)

        chi_q.append(chi(Q))
        chi_v.append(chi(V))
    return jnp.stack(chi_q, axis=1), jnp.stack(chi_v, axis=1)


# ----------------------------------------------------------------------------
if __name__ == "__main__":
    B, N, H, D, heads = 2, 6, 32, 8, 3
    neighbor_nums = [3, 4, 3, 5]          # per-agent node counts (self + neighbors)

    # local_edges[a]: (2, nns); row 0 = [self_node, neighbor nodes ...]
    local_edges = [
        np.array([[0, 1, 2], [0, 0, 0]], dtype=np.int32),
        np.array([[1, 0, 2, 3], [1, 1, 1, 1]], dtype=np.int32),
        np.array([[2, 3, 4], [2, 2, 2]], dtype=np.int32),
        np.array([[3, 1, 2, 4, 5], [3, 3, 3, 3, 3]], dtype=np.int32),
    ]

    key = jax.random.PRNGKey(0)
    kp, ko, ka = jax.random.split(key, 3)
    raw = init_raw_params(kp, H, D, N, neighbor_nums, heads)
    params = pack_params(raw, local_edges, H, D)

    observation = jax.random.normal(ko, (B, N, H), jnp.float32)
    action = jax.random.normal(ka, (B, N, H), jnp.float32)

    chi_q, chi_v = critic_forward(params, observation, action)
    jax.block_until_ready((chi_q, chi_v))

    n_agents = len(neighbor_nums)
    assert chi_q.shape == (B, n_agents) and chi_v.shape == (B, n_agents)
    assert bool(jnp.all(jnp.isfinite(chi_q))) and bool(jnp.all(jnp.isfinite(chi_v)))

    # correctness vs pure-JAX f32 reference (bf16 trunk -> loose tolerance)
    ref_q, ref_v = critic_reference(raw, observation, action, local_edges)
    np.testing.assert_allclose(np.asarray(chi_q), np.asarray(ref_q), rtol=5e-2, atol=5e-2)
    np.testing.assert_allclose(np.asarray(chi_v), np.asarray(ref_v), rtol=5e-2, atol=5e-2)

    print("KERNEL_OK")
</pallas_src>

<mosaic_0001>
module attributes {stable_mosaic.version = 11 : i64} {
  func.func @_critic_kernel(%arg0: i32, %arg1: memref<8x192xf32, #tpu.memory_space<vmem>>, %arg2: memref<8x192xf32, #tpu.memory_space<vmem>>, %arg3: memref<192x384xbf16, #tpu.memory_space<vmem>>, %arg4: memref<192x384xbf16, #tpu.memory_space<vmem>>, %arg5: memref<1x384xf32, #tpu.memory_space<vmem>>, %arg6: memref<384x384xf32, #tpu.memory_space<vmem>>, %arg7: memref<384x96xbf16, #tpu.memory_space<vmem>>, %arg8: memref<1x96xf32, #tpu.memory_space<vmem>>, %arg9: memref<96x160xf32, #tpu.memory_space<vmem>>, %arg10: memref<96x160xf32, #tpu.memory_space<vmem>>, %arg11: memref<96x8xf32, #tpu.memory_space<vmem>>, %arg12: memref<160x8xf32, #tpu.memory_space<vmem>>, %arg13: memref<8x8xf32, #tpu.memory_space<vmem>>) attributes {dimension_semantics = [#tpu.dimension_semantics<parallel>], iteration_bounds = array<i64: 1>, scalar_prefetch = 0 : i64, scratch_operands = 0 : i64, tpu.core_type = #tpu.core_type<tc>, window_params = [{transform_indices = @transform_0, window_bounds = array<i64: 8, 192>}, {transform_indices = @transform_1, window_bounds = array<i64: 8, 192>}, {pipeline_mode = #tpu.pipeline_mode<synchronous>, transform_indices = @transform_2, window_bounds = array<i64: 192, 384>}, {pipeline_mode = #tpu.pipeline_mode<synchronous>, transform_indices = @transform_3, window_bounds = array<i64: 192, 384>}, {pipeline_mode = #tpu.pipeline_mode<synchronous>, transform_indices = @transform_4, window_bounds = array<i64: 1, 384>}, {pipeline_mode = #tpu.pipeline_mode<synchronous>, transform_indices = @transform_5, window_bounds = array<i64: 384, 384>}, {pipeline_mode = #tpu.pipeline_mode<synchronous>, transform_indices = @transform_6, window_bounds = array<i64: 384, 96>}, {pipeline_mode = #tpu.pipeline_mode<synchronous>, transform_indices = @transform_7, window_bounds = array<i64: 1, 96>}, {pipeline_mode = #tpu.pipeline_mode<synchronous>, transform_indices = @transform_8, window_bounds = array<i64: 96, 160>}, {pipeline_mode = #tpu.pipeline_mode<synchronous>, transform_indices = @transform_9, window_bounds = array<i64: 96, 160>}, {pipeline_mode = #tpu.pipeline_mode<synchronous>, transform_indices = @transform_10, window_bounds = array<i64: 96, 8>}, {pipeline_mode = #tpu.pipeline_mode<synchronous>, transform_indices = @transform_11, window_bounds = array<i64: 160, 8>}, {transform_indices = @transform_12, window_bounds = array<i64: 8, 8>}]} {
    %c0 = arith.constant 0 : index
    %c0_0 = arith.constant 0 : index
    %0 = vector.load %arg1[%c0, %c0_0] : memref<8x192xf32, #tpu.memory_space<vmem>>, vector<8x192xf32>
    %1 = arith.truncf %0 : vector<8x192xf32> to vector<8x192xbf16>
    %c0_1 = arith.constant 0 : index
    %c0_2 = arith.constant 0 : index
    %2 = vector.load %arg2[%c0_1, %c0_2] : memref<8x192xf32, #tpu.memory_space<vmem>>, vector<8x192xf32>
    %3 = arith.truncf %2 : vector<8x192xf32> to vector<8x192xbf16>
    %c0_3 = arith.constant 0 : index
    %c0_4 = arith.constant 0 : index
    %4 = vector.load %arg3[%c0_3, %c0_4] : memref<192x384xbf16, #tpu.memory_space<vmem>>, vector<192x384xbf16>
    %cst = arith.constant dense<0.000000e+00> : vector<8x384xf32>
    %5 = tpu.matmul %1, %4, %cst {dimension_numbers = #tpu.dot_dimension_numbers<[1], [0], [0], [1], [0, 0, 1, 1], [], []>} : vector<8x192xbf16>, vector<192x384xbf16>, vector<8x384xf32> -> vector<8x384xf32>
    %c0_5 = arith.constant 0 : index
    %c0_6 = arith.constant 0 : index
    %6 = vector.load %arg4[%c0_5, %c0_6] : memref<192x384xbf16, #tpu.memory_space<vmem>>, vector<192x384xbf16>
    %cst_7 = arith.constant dense<0.000000e+00> : vector<8x384xf32>
    %7 = tpu.matmul %3, %6, %cst_7 {dimension_numbers = #tpu.dot_dimension_numbers<[1], [0], [0], [1], [0, 0, 1, 1], [], []>} : vector<8x192xbf16>, vector<192x384xbf16>, vector<8x384xf32> -> vector<8x384xf32>
    %8 = arith.addf %5, %7 : vector<8x384xf32>
    %c0_8 = arith.constant 0 : index
    %c0_9 = arith.constant 0 : index
    %9 = vector.load %arg5[%c0_8, %c0_9] : memref<1x384xf32, #tpu.memory_space<vmem>>, vector<1x384xf32>
    %10 = vector.broadcast %9 : vector<1x384xf32> to vector<8x384xf32>
    %11 = arith.addf %8, %10 : vector<8x384xf32>
    %c0_10 = arith.constant 0 : index
    %c0_11 = arith.constant 0 : index
    %12 = vector.load %arg6[%c0_10, %c0_11] : memref<384x384xf32, #tpu.memory_space<vmem>>, vector<384x384xf32>
    %cst_12 = arith.constant dense<0.000000e+00> : vector<8x384xf32>
    %13 = tpu.matmul %11, %12, %cst_12 {dimension_numbers = #tpu.dot_dimension_numbers<[1], [0], [0], [1], [0, 0, 1, 1], [], []>} : vector<8x384xf32>, vector<384x384xf32>, vector<8x384xf32> -> vector<8x384xf32>
    %14 = arith.mulf %11, %11 : vector<8x384xf32>
    %cst_13 = arith.constant dense<0.000000e+00> : vector<8x384xf32>
    %15 = tpu.matmul %14, %12, %cst_13 {dimension_numbers = #tpu.dot_dimension_numbers<[1], [0], [0], [1], [0, 0, 1, 1], [], []>} : vector<8x384xf32>, vector<384x384xf32>, vector<8x384xf32> -> vector<8x384xf32>
    %16 = arith.mulf %13, %13 : vector<8x384xf32>
    %17 = arith.subf %15, %16 : vector<8x384xf32>
    %cst_14 = arith.constant 0.000000e+00 : f32
    %18 = vector.broadcast %cst_14 : f32 to vector<8x384xf32>
    %19 = arith.maximumf %17, %18 : vector<8x384xf32>
    %20 = arith.subf %11, %13 : vector<8x384xf32>
    %cst_15 = arith.constant 9.99999974E-6 : f32
    %21 = vector.broadcast %cst_15 : f32 to vector<8x384xf32>
    %22 = arith.addf %19, %21 : vector<8x384xf32>
    %23 = math.rsqrt %22 : vector<8x384xf32>
    %24 = arith.mulf %20, %23 : vector<8x384xf32>
    %cst_16 = arith.constant 0.000000e+00 : f32
    %25 = vector.broadcast %cst_16 : f32 to vector<8x384xf32>
    %26 = arith.maximumf %24, %25 : vector<8x384xf32>
    %27 = arith.truncf %26 : vector<8x384xf32> to vector<8x384xbf16>
    %c0_17 = arith.constant 0 : index
    %c0_18 = arith.constant 0 : index
    %28 = vector.load %arg7[%c0_17, %c0_18] : memref<384x96xbf16, #tpu.memory_space<vmem>>, vector<384x96xbf16>
    %cst_19 = arith.constant dense<0.000000e+00> : vector<8x96xf32>
    %29 = tpu.matmul %27, %28, %cst_19 {dimension_numbers = #tpu.dot_dimension_numbers<[1], [0], [0], [1], [0, 0, 1, 1], [], []>} : vector<8x384xbf16>, vector<384x96xbf16>, vector<8x96xf32> -> vector<8x96xf32>
    %c0_20 = arith.constant 0 : index
    %c0_21 = arith.constant 0 : index
    %30 = vector.load %arg8[%c0_20, %c0_21] : memref<1x96xf32, #tpu.memory_space<vmem>>, vector<1x96xf32>
    %31 = vector.broadcast %30 : vector<1x96xf32> to vector<8x96xf32>
    %32 = arith.addf %29, %31 : vector<8x96xf32>
    %c0_22 = arith.constant 0 : index
    %c0_23 = arith.constant 0 : index
    %33 = vector.load %arg9[%c0_22, %c0_23] : memref<96x160xf32, #tpu.memory_space<vmem>>, vector<96x160xf32>
    %cst_24 = arith.constant dense<0.000000e+00> : vector<8x160xf32>
    %34 = tpu.matmul %32, %33, %cst_24 {dimension_numbers = #tpu.dot_dimension_numbers<[1], [0], [0], [1], [0, 0, 1, 1], [], []>} : vector<8x96xf32>, vector<96x160xf32>, vector<8x160xf32> -> vector<8x160xf32>
    %c0_25 = arith.constant 0 : index
    %c0_26 = arith.constant 0 : index
    %35 = vector.load %arg10[%c0_25, %c0_26] : memref<96x160xf32, #tpu.memory_space<vmem>>, vector<96x160xf32>
    %cst_27 = arith.constant dense<0.000000e+00> : vector<8x160xf32>
    %36 = tpu.matmul %32, %35, %cst_27 {dimension_numbers = #tpu.dot_dimension_numbers<[1], [0], [0], [1], [0, 0, 1, 1], [], []>} : vector<8x96xf32>, vector<96x160xf32>, vector<8x160xf32> -> vector<8x160xf32>
    %37 = arith.minimumf %34, %36 : vector<8x160xf32>
    %c0_28 = arith.constant 0 : index
    %c0_29 = arith.constant 0 : index
    %38 = vector.load %arg11[%c0_28, %c0_29] : memref<96x8xf32, #tpu.memory_space<vmem>>, vector<96x8xf32>
    %cst_30 = arith.constant dense<0.000000e+00> : vector<8x8xf32>
    %39 = tpu.matmul %32, %38, %cst_30 {dimension_numbers = #tpu.dot_dimension_numbers<[1], [0], [0], [1], [0, 0, 1, 1], [], []>} : vector<8x96xf32>, vector<96x8xf32>, vector<8x8xf32> -> vector<8x8xf32>
    %c0_31 = arith.constant 0 : index
    %c0_32 = arith.constant 0 : index
    %40 = vector.load %arg12[%c0_31, %c0_32] : memref<160x8xf32, #tpu.memory_space<vmem>>, vector<160x8xf32>
    %cst_33 = arith.constant dense<0.000000e+00> : vector<8x8xf32>
    %41 = tpu.matmul %37, %40, %cst_33 {dimension_numbers = #tpu.dot_dimension_numbers<[1], [0], [0], [1], [0, 0, 1, 1], [], []>} : vector<8x160xf32>, vector<160x8xf32>, vector<8x8xf32> -> vector<8x8xf32>
    %42 = arith.addf %39, %41 : vector<8x8xf32>
    %c0_34 = arith.constant 0 : index
    %c0_35 = arith.constant 0 : index
    %43 = vector.load %arg13[%c0_34, %c0_35] : memref<8x8xf32, #tpu.memory_space<vmem>>, vector<8x8xf32>
    tpu.vector_store %arg13[%c0_34, %c0_35], %42 {strides = array<i32>} : memref<8x8xf32, #tpu.memory_space<vmem>>, vector<8x8xf32>,
    return
  }
  func.func @transform_0(%arg0: i32) -> (i32, i32) {
    %c0_i32 = arith.constant 0 : i32
    %c0_i32_0 = arith.constant 0 : i32
    return %arg0, %c0_i32 : i32, i32
  }
  func.func @transform_1(%arg0: i32) -> (i32, i32) {
    %c0_i32 = arith.constant 0 : i32
    %c0_i32_0 = arith.constant 0 : i32
    return %arg0, %c0_i32 : i32, i32
  }
  func.func @transform_2(%arg0: i32) -> (i32, i32) {
    %c0_i32 = arith.constant 0 : i32
    %c0_i32_0 = arith.constant 0 : i32
    %c0_i32_1 = arith.constant 0 : i32
    return %c0_i32, %c0_i32_0 : i32, i32
  }
  func.func @transform_3(%arg0: i32) -> (i32, i32) {
    %c0_i32 = arith.constant 0 : i32
    %c0_i32_0 = arith.constant 0 : i32
    %c0_i32_1 = arith.constant 0 : i32
    return %c0_i32, %c0_i32_0 : i32, i32
  }
  func.func @transform_4(%arg0: i32) -> (i32, i32) {
    %c0_i32 = arith.constant 0 : i32
    %c0_i32_0 = arith.constant 0 : i32
    %c0_i32_1 = arith.constant 0 : i32
    return %c0_i32, %c0_i32_0 : i32, i32
  }
  func.func @transform_5(%arg0: i32) -> (i32, i32) {
    %c0_i32 = arith.constant 0 : i32
    %c0_i32_0 = arith.constant 0 : i32
    %c0_i32_1 = arith.constant 0 : i32
    return %c0_i32, %c0_i32_0 : i32, i32
  }
  func.func @transform_6(%arg0: i32) -> (i32, i32) {
    %c0_i32 = arith.constant 0 : i32
    %c0_i32_0 = arith.constant 0 : i32
    %c0_i32_1 = arith.constant 0 : i32
    return %c0_i32, %c0_i32_0 : i32, i32
  }
  func.func @transform_7(%arg0: i32) -> (i32, i32) {
    %c0_i32 = arith.constant 0 : i32
    %c0_i32_0 = arith.constant 0 : i32
    %c0_i32_1 = arith.constant 0 : i32
    return %c0_i32, %c0_i32_0 : i32, i32
  }
  func.func @transform_8(%arg0: i32) -> (i32, i32) {
    %c0_i32 = arith.constant 0 : i32
    %c0_i32_0 = arith.constant 0 : i32
    %c0_i32_1 = arith.constant 0 : i32
    return %c0_i32, %c0_i32_0 : i32, i32
  }
  func.func @transform_9(%arg0: i32) -> (i32, i32) {
    %c0_i32 = arith.constant 0 : i32
    %c0_i32_0 = arith.constant 0 : i32
    %c0_i32_1 = arith.constant 0 : i32
    return %c0_i32, %c0_i32_0 : i32, i32
  }
  func.func @transform_10(%arg0: i32) -> (i32, i32) {
    %c0_i32 = arith.constant 0 : i32
    %c0_i32_0 = arith.constant 0 : i32
    %c0_i32_1 = arith.constant 0 : i32
    return %c0_i32, %c0_i32_0 : i32, i32
  }
  func.func @transform_11(%arg0: i32) -> (i32, i32) {
    %c0_i32 = arith.constant 0 : i32
    %c0_i32_0 = arith.constant 0 : i32
    %c0_i32_1 = arith.constant 0 : i32
    return %c0_i32, %c0_i32_0 : i32, i32
  }
  func.func @transform_12(%arg0: i32) -> (i32, i32) {
    %c0_i32 = arith.constant 0 : i32
    %c0_i32_0 = arith.constant 0 : i32
    return %arg0, %c0_i32 : i32, i32
  }
}

</mosaic_0001>

<bundles_post_ra>
// kernel: tpu_custom_call.1
= control target key start
LH: loop header
LB: loop body
LE: loop exit
PB: predicated region body
PF: predicated region fallthrough
CT: control target
= control target key end

     0   :  { %17 = vsyncpa [#allocation3], 0  ;;  %s4424_s0 = inlined_call_operand.vmem [shape: f32[8,192], index: 0, kind: input, shape index: {}]   ;;  %s4425_s1 = inlined_call_operand.hbm [shape: f32[8,192], index: 1, kind: input, shape index: {}]   ;;  %s4426_s2 = inlined_call_operand.hbm [shape: bf16[192,384], index: 2, kind: input, shape index: {}]   ;;  %s4427_s3 = inlined_call_operand.hbm [shape: bf16[192,384], index: 3, kind: input, shape index: {}]   ;;  %s4428_s4 = inlined_call_operand.hbm [shape: f32[1,384], index: 4, kind: input, shape index: {}]   ;;  %s4429_s5 = inlined_call_operand.vmem [shape: f32[384,384], index: 5, kind: input, shape index: {}]   ;;  %s4430_s6 = inlined_call_operand.vmem [shape: bf16[384,96], index: 6, kind: input, shape index: {}]   ;;  %s4431_s7 = inlined_call_operand.vmem [shape: f32[1,96], index: 7, kind: input, shape index: {}]   ;;  %s4432_s8 = inlined_call_operand.vmem [shape: f32[96,160], index: 8, kind: input, shape index: {}]   ;;  %s4433_s9 = inlined_call_operand.vmem [shape: f32[96,160], index: 9, kind: input, shape index: {}]   ;;  %s4434_s10 = inlined_call_operand.vmem [shape: f32[96,8], index: 10, kind: input, shape index: {}]   ;;  %s4435_s11 = inlined_call_operand.vmem [shape: f32[160,8], index: 11, kind: input, shape index: {}]   ;;  %s4436_s12 = inlined_call_operand.hbm [shape: f32[8,8], index: 12, kind: output, shape index: {}]  }
   0x1   :  { %18 = vsyncpa [#allocation6], 0 }
   0x2   :  { %19 = vsyncpa [#allocation9], 0 }
   0x3   :  { %20 = vsyncpa [#allocation4], 0  ;;  %s3210_s21 = smov [#allocation5]   ;;  %s3092_s25 = scalar_lea.hbm %s4426_s2, 4608 }
   0x4   :  { %s38_s22 = sshll.u32 %s3210_s21, 4  ;;  %p3093_p0 = scmp.ne.s32.totalorder %s4426_s2, %s3092_s25  ;;  %s39_s22 = int_to_ptr.vmem [resolvable:$true] %s38_s22 }
   0x5   :  { %p3096_p1 = scmp.lt.u32.totalorder %s3092_s25, %s4426_s2 }
   0x7   :  { %p3098_p2 = pnand %p3096_p1, %p3093_p0 }
   0x9   :  { %3101 = shalt.err (!%p3098_p2)
}
   0xa   :  { %s3102_s30 = scalar_lea.vmem %s39_s22, 4608  ;;  %p3107_p4 = scmp.lt.s32.totalorder %s39_s22, %s39_s22 }
   0xb   :  { %p3103_p3 = scmp.ne.s32.totalorder %s39_s22, %s3102_s30  ;;  %p3108_p5 = scmp.lt.s32.totalorder %s3102_s30, %s3102_s30 }
   0xd   :  { %p3109_p6 = por %p3108_p5, %p3107_p4 }
   0xf   :  { %p3110_p7 = pnand %p3109_p6, %p3103_p3 }
  0x11   :  { %3113 = shalt.err (!%p3110_p7)
}
  0x12   :  { %s3211_s13 = smov 192   ;;  %s3212_s14 = smov 12  }
  0x13   :  { %44 = dma.hbm_to_vmem [thread:$0]  %s4426_s2, 4608, %s39_s22, [#allocation6], %s3211_s13, %s3211_s13, %s3212_s14  }
  0x14   :  { %s3213_s17 = smov [#allocation2]   ;;  %s3214_s19 = smov [#allocation7]  }
  0x15   :  { %s29_s18 = sshll.u32 %s3213_s17, 4  ;;  %s50_s20 = sshll.u32 %s3214_s19, 4  ;;  %s30_s18 = int_to_ptr.vmem [resolvable:$true] %s29_s18  ;;  %s51_s20 = int_to_ptr.vmem [resolvable:$true] %s50_s20 }
  0x16   :  { %s3114_s24 = scalar_lea.hbm %s4425_s1, 256 }
  0x17   :  { %p3115_p8 = scmp.ne.s32.totalorder %s4425_s1, %s3114_s24  ;;  %p3118_p9 = scmp.lt.u32.totalorder %s3114_s24, %s4425_s1 }
  0x19   :  { %p3120_p10 = pnand %p3118_p9, %p3115_p8 }
  0x1b   :  { %3123 = shalt.err (!%p3120_p10)
}
  0x1c   :  { %s3124_s2 = scalar_lea.vmem %s30_s18, 256  ;;  %p3129_p12 = scmp.lt.s32.totalorder %s30_s18, %s30_s18 }
  0x1d   :  { %p3125_p11 = scmp.ne.s32.totalorder %s30_s18, %s3124_s2  ;;  %p3130_p13 = scmp.lt.s32.totalorder %s3124_s2, %s3124_s2 }
  0x1f   :  { %p3131_p0 = por %p3130_p13, %p3129_p12 }
  0x21   :  { %p3132_p1 = pnand %p3131_p0, %p3125_p11 }
  0x23   :  { %3135 = shalt.err (!%p3132_p1)
}
  0x24   :  { %32 = dma.hbm_to_vmem [thread:$0]  %s4425_s1, 256, %s30_s18, [#allocation3]  }
  0x25   :  { %s3136_s16 = scalar_lea.hbm %s4427_s3, 4608 }
  0x26   :  { %p3137_p2 = scmp.ne.s32.totalorder %s4427_s3, %s3136_s16  ;;  %p3140_p3 = scmp.lt.u32.totalorder %s3136_s16, %s4427_s3 }
  0x28   :  { %p3142_p4 = pnand %p3140_p3, %p3137_p2 }
  0x2a   :  { %3145 = shalt.err (!%p3142_p4)
}
  0x2b   :  { %s3146_s24 = scalar_lea.vmem %s51_s20, 4608  ;;  %p3151_p6 = scmp.lt.s32.totalorder %s51_s20, %s51_s20 }
  0x2c   :  { %p3147_p5 = scmp.ne.s32.totalorder %s51_s20, %s3146_s24  ;;  %p3152_p7 = scmp.lt.s32.totalorder %s3146_s24, %s3146_s24 }
  0x2e   :  { %p3153_p8 = por %p3152_p7, %p3151_p6 }
  0x30   :  { %p3154_p9 = pnand %p3153_p8, %p3147_p5 }
  0x32   :  { %3157 = shalt.err (!%p3154_p9)
}
  0x33   :  { %56 = dma.hbm_to_vmem [thread:$0]  %s4427_s3, 4608, %s51_s20, [#allocation6], %s3211_s13, %s3211_s13, %s3212_s14  }
  0x34   :  { %s3215_s25 = smov [#allocation8]   ;;  %s3158_s2 = scalar_lea.hbm %s4428_s4, 48 }
  0x35   :  { %s63_s26 = sshll.u32 %s3215_s25, 4  ;;  %p3159_p10 = scmp.ne.s32.totalorder %s4428_s4, %s3158_s2  ;;  %s64_s26 = int_to_ptr.vmem [resolvable:$true] %s63_s26 }
  0x36   :  { %p3162_p11 = scmp.lt.u32.totalorder %s3158_s2, %s4428_s4 }
  0x38   :  { %p3164_p12 = pnand %p3162_p11, %p3159_p10 }
  0x3a   :  { %3167 = shalt.err (!%p3164_p12)
}
  0x3b   :  { %s3168_s16 = scalar_lea.vmem %s64_s26, 48  ;;  %s3172_s3 = scalar_lea.vmem %s64_s26, 64 }
  0x3c   :  { %p3169_p13 = scmp.ne.s32.totalorder %s64_s26, %s3168_s16  ;;  %p3173_p0 = scmp.lt.s32.totalorder %s64_s26, %s64_s26 }
  0x3d   :  { %p3174_p1 = scmp.lt.s32.totalorder %s3172_s3, %s3168_s16 }
  0x3f   :  { %p3175_p2 = por %p3174_p1, %p3173_p0 }
  0x41   :  { %p3176_p3 = pnand %p3175_p2, %p3169_p13 }
  0x43   :  { %3179 = shalt.err (!%p3176_p3)
}
  0x44   :  { %66 = dma.hbm_to_vmem [thread:$0]  %s4428_s4, 48, %s64_s26, [#allocation9]  }
  0x45   :  { %3202 = dma.done.wait [#allocation3], 256  }
  0x46   :  { %3203 = vsyncadd [#allocation3], 4294967040 }
  0x47   :  { %3204 = dma.done.wait [#allocation6], 9216  }
  0x48   :  { %3205 = vsyncadd [#allocation6], 4294958080 }
  0x49   :  { %3206 = dma.done.wait [#allocation9], 48  }
  0x4a   :  { %3207 = vsyncadd [#allocation9], 4294967248  ;;  %v3216_v0 = vmov 0   ;;  %v2966_v1 = vld [vmem:[#allocation7 + $0x4] ss:$12 sps:$4 sm:$0xff]   ;;  %v99_v25 = vld [vmem:[#allocation2 + $0x8] sm:$0xff] }
  0x4b   :  { %435 = vmatprep.subr.bf16.mxu1 %v3216_v0  ;;  %v2968_v2 = vld [vmem:[#allocation7 + $0x8] ss:$12 sps:$4 sm:$0xff]   ;;  %394 = vmatprep.subr.bf16.mxu0 %v2966_v1  ;;  %v2969_v3 = vld [vmem:[#allocation7] ss:$12 sps:$4 sm:$0xff]   ;;  %v2973_v6 = vld [vmem:[#allocation7 + $0x18] ss:$12 sps:$4 sm:$0xff]   ;;  %v101_v27 = vpack.c.bf16 %v99_v25, %v99_v25 }
  0x4c   :  { %436 = vmatpush1.bf16.msra.mxu1 %v2968_v2  ;;  %v2970_v4 = vld [vmem:[#allocation7 + $0x1c] ss:$12 sps:$4 sm:$0xff]   ;;  %395 = vmatpush1.bf16.msra.mxu0 %v2969_v3  ;;  %v2972_v5 = vld [vmem:[#allocation7 + $0x20] ss:$12 sps:$4 sm:$0xff]   ;;  %v2976_v8 = vld [vmem:[#allocation7 + $0x38] ss:$12 sps:$4 sm:$0xff]  }
  0x4d   :  { %437 = vmatprep.subr.bf16.mxu1 %v3216_v0  ;;  %396 = vmatprep.subr.bf16.mxu0 %v2970_v4  ;;  %v2974_v7 = vld [vmem:[#allocation7 + $0x34] ss:$12 sps:$4 sm:$0xff]   ;;  %v2977_v9 = vld [vmem:[#allocation7 + $0x30] ss:$12 sps:$4 sm:$0xff]   ;;  %v2978_v10 = vld [vmem:[#allocation7 + $0x4c] ss:$12 sps:$4 sm:$0xff]  }
  0x4e   :  { %v2980_v11 = vld [vmem:[#allocation7 + $0x50] ss:$12 sps:$4 sm:$0xff]   ;;  %v2981_v12 = vld [vmem:[#allocation7 + $0x48] ss:$12 sps:$4 sm:$0xff]   ;;  %v2985_v15 = vld [vmem:[#allocation7 + $0x60] ss:$12 sps:$4 sm:$0xff]  }
  0x4f   :  { %v2982_v13 = vld [vmem:[#allocation7 + $0x64] ss:$12 sps:$4 sm:$0xff]   ;;  %v2984_v14 = vld [vmem:[#allocation7 + $0x68] ss:$12 sps:$4 sm:$0xff]   ;;  %v2988_v17 = vld [vmem:[#allocation7 + $0x80] ss:$12 sps:$4 sm:$0xff]  }
  0x50   :  { %438 = vmatpush1.bf16.msra.mxu1 %v2972_v5  ;;  %397 = vmatpush1.bf16.msra.mxu0 %v2973_v6  ;;  %v2986_v16 = vld [vmem:[#allocation7 + $0x7c] ss:$12 sps:$4 sm:$0xff]   ;;  %v2989_v18 = vld [vmem:[#allocation7 + $0x78] ss:$12 sps:$4 sm:$0xff]   ;;  %v2990_v19 = vld [vmem:[#allocation7 + $0x94] ss:$12 sps:$4 sm:$0xff]  }
  0x51   :  { %439 = vmatprep.subr.bf16.mxu1 %v3216_v0  ;;  %398 = vmatprep.subr.bf16.mxu0 %v2974_v7  ;;  %v2992_v20 = vld [vmem:[#allocation7 + $0x98] ss:$12 sps:$4 sm:$0xff]   ;;  %v2993_v21 = vld [vmem:[#allocation7 + $0x90] ss:$12 sps:$4 sm:$0xff]   ;;  %v2997_v24 = vld [vmem:[#allocation7 + $0xa8] ss:$12 sps:$4 sm:$0xff]  }
  0x52   :  { %v2994_v22 = vld [vmem:[#allocation7 + $0xac] ss:$12 sps:$4 sm:$0xff]   ;;  %v2996_v23 = vld [vmem:[#allocation7 + $0xb0] ss:$12 sps:$4 sm:$0xff]   ;;  %vm390_vm0 = vcmask 523264   ;;  %vm3219_vm1 = vmmov 0  }
  0x53   :  { %v2998_v26 = vld [vmem:[#allocation7 + $0xc4] ss:$12 sps:$4 sm:$0xff]   ;;  %v3000_v28 = vld [vmem:[#allocation7 + $0xc8] ss:$12 sps:$4 sm:$0xff]   ;;  %2216 = vmatprep.mubr.msk.bf16.mxu1 %vm390_vm0, %v101_v27  ;;  %v3001_v29 = vld [vmem:[#allocation7 + $0xc0] ss:$12 sps:$4 sm:$0xff]   ;;  %2215 = vmatprep.mubr.msk.bf16.mxu0 %vm390_vm0, %v101_v27 }
  0x54   :  { %440 = vmatpush1.bf16.msra.mxu1 %v2976_v8  ;;  %399 = vmatpush1.bf16.msra.mxu0 %v2977_v9  ;;  %v3002_v30 = vld [vmem:[#allocation7 + $0xdc] ss:$12 sps:$4 sm:$0xff]   ;;  %v3004_v31 = vld [vmem:[#allocation7 + $0xe0] ss:$12 sps:$4 sm:$0xff]   ;;  %v3005_v32 = vld [vmem:[#allocation7 + $0xd8] ss:$12 sps:$4 sm:$0xff]  }
  0x55   :  { %441 = vmatprep.subr.bf16.mxu1 %v3216_v0  ;;  %400 = vmatprep.subr.bf16.mxu0 %v2978_v10  ;;  %v3006_v33 = vld [vmem:[#allocation7 + $0xf4] ss:$12 sps:$4 sm:$0xff]   ;;  %v3008_v34 = vld [vmem:[#allocation7 + $0xf8] ss:$12 sps:$4 sm:$0xff]   ;;  %v3009_v35 = vld [vmem:[#allocation7 + $0xf0] ss:$12 sps:$4 sm:$0xff]  }
  0x56   :  { %v3010_v36 = vld [vmem:[#allocation7 + $0x10c] ss:$12 sps:$4 sm:$0xff]   ;;  %v3012_v37 = vld [vmem:[#allocation7 + $0x110] ss:$12 sps:$4 sm:$0xff]   ;;  %v3013_v39 = vld [vmem:[#allocation7 + $0x108] ss:$12 sps:$4 sm:$0xff]  }
  0x57   :  { %v98_v38 = vld [vmem:[#allocation2] sm:$0xff]  ;;  %v3014_v43 = vld [vmem:[#allocation5] ss:$12 sps:$4 sm:$0xff]   ;;  %v3020_v44 = vld [vmem:[#allocation5 + $0x1c] ss:$12 sps:$4 sm:$0xff]   ;;  %vm1812_vm2 = vcmask 785408  }
  0x58   :  { %442 = vmatpush1.bf16.msra.mxu1 %v2980_v11  ;;  %401 = vmatpush1.bf16.msra.mxu0 %v2981_v12  ;;  %v3016_v40 = vld [vmem:[#allocation5 + $0x4] ss:$12 sps:$4 sm:$0xff]   ;;  %v100_v41 = vpack.c.bf16 %v98_v38, %v98_v38  ;;  %v3017_v42 = vld [vmem:[#allocation5 + $0x8] ss:$12 sps:$4 sm:$0xff]   ;;  %v3021_v45 = vld [vmem:[#allocation5 + $0x20] ss:$12 sps:$4 sm:$0xff]  }
  0x59   :  { %443 = vmatprep.subr.bf16.mxu1 %v3216_v0  ;;  %402 = vmatprep.subr.bf16.mxu0 %v2982_v13  ;;  %v3018_v46 = vld [vmem:[#allocation5 + $0x18] ss:$12 sps:$4 sm:$0xff]   ;;  %v3024_v47 = vld [vmem:[#allocation5 + $0x34] ss:$12 sps:$4 sm:$0xff]   ;;  %v3022_v49 = vld [vmem:[#allocation5 + $0x30] ss:$12 sps:$4 sm:$0xff]  }
  0x5a   :  { %v3025_v48 = vld [vmem:[#allocation5 + $0x38] ss:$12 sps:$4 sm:$0xff]   ;;  %v3029_v53 = vld [vmem:[#allocation5 + $0x50] ss:$12 sps:$4 sm:$0xff]   ;;  %v3026_v54 = vld [vmem:[#allocation5 + $0x48] ss:$12 sps:$4 sm:$0xff]  }
  0x5b   :  { %v95_v50 = vld [vmem:[%s4424_s0 + $0x8] sm:$0xff]  ;;  %v3032_v55 = vld [vmem:[#allocation5 + $0x64] ss:$12 sps:$4 sm:$0xff]   ;;  %v3033_v56 = vld [vmem:[#allocation5 + $0x68] ss:$12 sps:$4 sm:$0xff]   ;;  %vm2016_vm3 = vcmask 261120  }
  0x5c   :  { %444 = vmatpush1.bf16.msra.mxu1 %v2984_v14  ;;  %403 = vmatpush1.bf16.msra.mxu0 %v2985_v15  ;;  %v3028_v51 = vld [vmem:[#allocation5 + $0x4c] ss:$12 sps:$4 sm:$0xff]   ;;  %v97_v52 = vpack.c.bf16 %v95_v50, %v95_v50  ;;  %v3036_v58 = vld [vmem:[#allocation5 + $0x7c] ss:$12 sps:$4 sm:$0xff]   ;;  %v3040_v61 = vld [vmem:[#allocation5 + $0x94] ss:$12 sps:$4 sm:$0xff]  }
  0x5d   :  { %445 = vmatprep.subr.bf16.mxu1 %v3216_v0  ;;  %404 = vmatprep.subr.bf16.mxu0 %v2986_v16  ;;  %v3030_v57 = vld [vmem:[#allocation5 + $0x60] ss:$12 sps:$4 sm:$0xff]   ;;  %v3034_v60 = vld [vmem:[#allocation5 + $0x78] ss:$12 sps:$4 sm:$0xff]   ;;  %v3038_v63 = vld [vmem:[#allocation5 + $0x90] ss:$12 sps:$4 sm:$0xff]  }
  0x5e   :  { %v3037_v59 = vld [vmem:[#allocation5 + $0x80] ss:$12 sps:$4 sm:$0xff]   ;;  %v3041_v62 = vld [vmem:[#allocation5 + $0x98] ss:$12 sps:$4 sm:$0xff]   ;;  %v3045_v2 = vld [vmem:[#allocation5 + $0xb0] ss:$12 sps:$4 sm:$0xff]  }
  0x5f   :  { %v3044_v1 = vld [vmem:[#allocation5 + $0xac] ss:$12 sps:$4 sm:$0xff]   ;;  %v3042_v3 = vld [vmem:[#allocation5 + $0xa8] ss:$12 sps:$4 sm:$0xff]   ;;  %v3048_v4 = vld [vmem:[#allocation5 + $0xc4] ss:$12 sps:$4 sm:$0xff]  }
  0x60   :  { %446 = vmatpush1.bf16.msra.mxu1 %v2988_v17  ;;  %405 = vmatpush1.bf16.msra.mxu0 %v2989_v18  ;;  %v3049_v5 = vld [vmem:[#allocation5 + $0xc8] ss:$12 sps:$4 sm:$0xff]   ;;  %v3046_v6 = vld [vmem:[#allocation5 + $0xc0] ss:$12 sps:$4 sm:$0xff]   ;;  %v3050_v9 = vld [vmem:[#allocation5 + $0xd8] ss:$12 sps:$4 sm:$0xff]  }
  0x61   :  { %447 = vmatprep.subr.bf16.mxu1 %v3216_v0  ;;  %406 = vmatprep.subr.bf16.mxu0 %v2990_v19  ;;  %v3052_v7 = vld [vmem:[#allocation5 + $0xdc] ss:$12 sps:$4 sm:$0xff]   ;;  %v3053_v8 = vld [vmem:[#allocation5 + $0xe0] ss:$12 sps:$4 sm:$0xff]   ;;  %v3057_v11 = vld [vmem:[#allocation5 + $0xf8] ss:$12 sps:$4 sm:$0xff]  }
  0x62   :  { %v3056_v10 = vld [vmem:[#allocation5 + $0xf4] ss:$12 sps:$4 sm:$0xff]   ;;  %v3054_v12 = vld [vmem:[#allocation5 + $0xf0] ss:$12 sps:$4 sm:$0xff]   ;;  %v3060_v13 = vld [vmem:[#allocation5 + $0x10c] ss:$12 sps:$4 sm:$0xff]  }
  0x63   :  { %v772_v14 = vld [vmem:[%s4429_s5 + $0x8] sm:$0xff]  ;;  %v775_v15 = vld [vmem:[%s4429_s5 + $0x20] sm:$0xff]  ;;  %v789_v38 = vld [vmem:[%s4429_s5 + $0x90] sm:$0xff]  ;;  %s3220_s29 = smov [#allocation10]   ;;  %vm2160_vm4 = vcmask 64512  }
  0x64   :  { %448 = vmatpush1.bf16.msra.mxu1 %v2992_v20  ;;  %407 = vmatpush1.bf16.msra.mxu0 %v2993_v21  ;;  %v3061_v16 = vld [vmem:[#allocation5 + $0x110] ss:$12 sps:$4 sm:$0xff]   ;;  %v3058_v18 = vld [vmem:[#allocation5 + $0x108] ss:$12 sps:$4 sm:$0xff]   ;;  %v3380_v19 = vpack.c.bf16 %v775_v15, %v772_v14  ;;  %v801_v50 = vld [vmem:[%s4429_s5 + $0xf0] sm:$0xff]  ;;  %s2168_s30 = sshll.u32 %s3220_s29, 4  ;;  %s2169_s30 = int_to_ptr.vmem [resolvable:$true] %s2168_s30 }
  0x65   :  { %449 = vmatprep.subr.bf16.mxu1 %v3216_v0  ;;  %408 = vmatprep.subr.bf16.mxu0 %v2994_v22  ;;  %v94_v17 = vld [vmem:[%s4424_s0] sm:$0xff]  ;;  %v774_v21 = vld [vmem:[%s4429_s5 + $0x18] sm:$0xff]  ;;  %v780_v27 = vld [vmem:[%s4429_s5 + $0x48] sm:$0xff]  ;;  %s3180_s15 = scalar_lea.vmem %s2169_s30, 128  ;;  %p3185_p5 = scmp.lt.s32.totalorder %s2169_s30, %s2169_s30 }
  0x66   :  { %v771_v20 = vld [vmem:[%s4429_s5] sm:$0xff]  ;;  %v96_v22 = vpack.c.bf16 %v94_v17, %v94_v17  ;;  %v880_v15 = vld [vmem:[%s4429_s5 + $0x368] sm:$0xff]  ;;  %p3181_p4 = scmp.ne.s32.totalorder %s2169_s30, %s3180_s15  ;;  %p3186_p6 = scmp.lt.s32.totalorder %s3180_s15, %s3180_s15 }
  0x67   :  { %v879_v17 = vld [vmem:[%s4429_s5 + $0x360] sm:$0xff] }
  0x68   :  { %450 = vmatpush1.bf16.msra.mxu1 %v2996_v23  ;;  %409 = vmatpush1.bf16.msra.mxu0 %v2997_v24  ;;  %v778_v23 = vld [vmem:[%s4429_s5 + $0x38] sm:$0xff]  ;;  %v3394_v24 = vpack.c.bf16 %v774_v21, %v771_v20  ;;  %p3187_p7 = por %p3186_p6, %p3185_p5 }
  0x69   :  { %451 = vmatprep.subr.bf16.mxu1 %v3216_v0  ;;  %410 = vmatprep.subr.bf16.mxu0 %v2998_v26  ;;  %v777_v26 = vld [vmem:[%s4429_s5 + $0x30] sm:$0xff] }
  0x6a   :  { %p3188_p8 = pnand %p3187_p7, %p3181_p4 }
  0x6c   :  { %452 = vmatpush1.bf16.msra.mxu1 %v3000_v28  ;;  %411 = vmatpush1.bf16.msra.mxu0 %v3001_v29  ;;  %v784_v28 = vld [vmem:[%s4429_s5 + $0x68] sm:$0xff]  ;;  %v787_v29 = vld [vmem:[%s4429_s5 + $0x80] sm:$0xff] }
  0x6d   :  { %453 = vmatprep.subr.bf16.mxu1 %v3216_v0  ;;  %412 = vmatprep.subr.bf16.mxu0 %v3002_v30  ;;  %v3412_v30 = vpack.c.bf16 %v780_v27, %v777_v26  ;;  %v889_v26 = vld [vmem:[%s4429_s5 + $0x3b0] sm:$0xff] }
  0x70   :  { %454 = vmatpush1.bf16.msra.mxu1 %v3004_v31  ;;  %413 = vmatpush1.bf16.msra.mxu0 %v3005_v32  ;;  %v3415_v31 = vpack.c.bf16 %v787_v29, %v784_v28  ;;  %v783_v32 = vld [vmem:[%s4429_s5 + $0x60] sm:$0xff]  ;;  %v822_v28 = vld [vmem:[%s4429_s5 + $0x198] sm:$0xff] }
  0x71   :  { %455 = vmatprep.subr.bf16.mxu1 %v3216_v0  ;;  %414 = vmatprep.subr.bf16.mxu0 %v3006_v33  ;;  %v786_v33 = vld [vmem:[%s4429_s5 + $0x78] sm:$0xff] }
  0x74   :  { %456 = vmatpush1.bf16.msra.mxu1 %v3008_v34  ;;  %415 = vmatpush1.bf16.msra.mxu0 %v3009_v35  ;;  %v3425_v34 = vpack.c.bf16 %v786_v33, %v783_v32  ;;  %v790_v35 = vld [vmem:[%s4429_s5 + $0x98] sm:$0xff]  ;;  %v885_v32 = vld [vmem:[%s4429_s5 + $0x390] sm:$0xff]  ;;  %v888_v33 = vld [vmem:[%s4429_s5 + $0x3a8] sm:$0xff] }
  0x75   :  { %457 = vmatprep.subr.bf16.mxu1 %v3216_v0  ;;  %416 = vmatprep.subr.bf16.mxu0 %v3010_v36  ;;  %v793_v36 = vld [vmem:[%s4429_s5 + $0xb0] sm:$0xff] }
  0x78   :  { %458 = vmatpush1.bf16.msra.mxu1 %v3012_v37  ;;  %417 = vmatpush1.bf16.msra.mxu0 %v3013_v39  ;;  %v3434_v37 = vpack.c.bf16 %v793_v36, %v790_v35  ;;  %v792_v39 = vld [vmem:[%s4429_s5 + $0xa8] sm:$0xff]  ;;  %v826_v35 = vld [vmem:[%s4429_s5 + $0x1b8] sm:$0xff]  ;;  %v829_v36 = vld [vmem:[%s4429_s5 + $0x1d0] sm:$0xff] }
  0x79   :  { %711 = vmatprep.subr.bf16.mxu1 %v3216_v0  ;;  %670 = vmatprep.subr.bf16.mxu0 %v3016_v40  ;;  %v3442_v40 = vpack.c.bf16 %v792_v39, %v789_v38  ;;  %v892_v38 = vld [vmem:[%s4429_s5 + $0x3c8] sm:$0xff]  ;;  %v895_v39 = vld [vmem:[%s4429_s5 + $0x3e0] sm:$0xff] }
  0x7b   :  { %468 = vmatmul.mubr.bf16.vlgmr.msra.gmra.mrb[0].mxu1 %v100_v41  ;;  %427 = vmatmul.mubr.bf16.vlgmr.msra.gmra.mrb[0].mxu0 %v100_v41  ;;  %v796_v41 = vld [vmem:[%s4429_s5 + $0xc8] sm:$0xff] }
  0x7c   :  { %712 = vmatpush1.bf16.msra.mxu1 %v3017_v42  ;;  %671 = vmatpush1.bf16.msra.mxu0 %v3014_v43  ;;  %v799_v42 = vld [vmem:[%s4429_s5 + $0xe0] sm:$0xff] }
  0x7d   :  { %713 = vmatprep.subr.bf16.mxu1 %v3216_v0  ;;  %672 = vmatprep.subr.bf16.mxu0 %v3020_v44  ;;  %v795_v43 = vld [vmem:[%s4429_s5 + $0xc0] sm:$0xff]  ;;  %v3455_v44 = vpack.c.bf16 %v799_v42, %v796_v41  ;;  %v825_v42 = vld [vmem:[%s4429_s5 + $0x1b0] sm:$0xff] }
  0x7e   :  { %2254 = vmatprep.mubr.msk.bf16.mxu1 %vm390_vm0, %v97_v52  ;;  %2253 = vmatprep.mubr.msk.bf16.mxu0 %vm390_vm0, %v97_v52  ;;  %v808_v52 = vld [vmem:[%s4429_s5 + $0x128] sm:$0xff] }
  0x80   :  { %714 = vmatpush1.bf16.msra.mxu1 %v3021_v45  ;;  %673 = vmatpush1.bf16.msra.mxu0 %v3018_v46  ;;  %v798_v45 = vld [vmem:[%s4429_s5 + $0xd8] sm:$0xff] }
  0x81   :  { %715 = vmatprep.subr.bf16.mxu1 %v3216_v0  ;;  %674 = vmatprep.subr.bf16.mxu0 %v3024_v47  ;;  %v802_v46 = vld [vmem:[%s4429_s5 + $0xf8] sm:$0xff]  ;;  %v805_v47 = vld [vmem:[%s4429_s5 + $0x110] sm:$0xff] }
  0x84   :  { %716 = vmatpush1.bf16.msra.mxu1 %v3025_v48  ;;  %675 = vmatpush1.bf16.msra.mxu0 %v3022_v49  ;;  %v3466_v48 = vpack.c.bf16 %v798_v45, %v795_v43  ;;  %v3468_v49 = vpack.c.bf16 %v805_v47, %v802_v46  ;;  %v828_v43 = vld [vmem:[%s4429_s5 + $0x1c8] sm:$0xff]  ;;  %v3620_v45 = vpack.c.bf16 %v888_v33, %v885_v32 }
  0x85   :  { %717 = vmatprep.subr.bf16.mxu1 %v3216_v0  ;;  %676 = vmatprep.subr.bf16.mxu0 %v3028_v51  ;;  %v804_v51 = vld [vmem:[%s4429_s5 + $0x108] sm:$0xff]  ;;  %v3623_v46 = vpack.c.bf16 %v829_v36, %v826_v35  ;;  %v843_v36 = vld [vmem:[%s4429_s5 + $0x240] sm:$0xff] }
  0x86   :  { %v832_v47 = vld [vmem:[%s4429_s5 + $0x1e8] sm:$0xff] }
  0x88   :  { %718 = vmatpush1.bf16.msra.mxu1 %v3029_v53  ;;  %677 = vmatpush1.bf16.msra.mxu0 %v3026_v54  ;;  %v811_v53 = vld [vmem:[%s4429_s5 + $0x140] sm:$0xff]  ;;  %v3484_v54 = vpack.c.bf16 %v804_v51, %v801_v50  ;;  %v3629_v50 = vpack.c.bf16 %v895_v39, %v892_v38  ;;  %v846_v38 = vld [vmem:[%s4429_s5 + $0x258] sm:$0xff] }
  0x89   :  { %719 = vmatprep.subr.bf16.mxu1 %v3216_v0  ;;  %678 = vmatprep.subr.bf16.mxu0 %v3032_v55  ;;  %v807_v55 = vld [vmem:[%s4429_s5 + $0x120] sm:$0xff]  ;;  %v850_v39 = vld [vmem:[%s4429_s5 + $0x278] sm:$0xff] }
  0x8a   :  { %4447 = vst [vmem:[#allocation15_spill] sm:$0xff] %v3629_v50  ;;  %v891_v51 = vld [vmem:[%s4429_s5 + $0x3c0] sm:$0xff] }
  0x8c   :  { %720 = vmatpush1.bf16.msra.mxu1 %v3033_v56  ;;  %679 = vmatpush1.bf16.msra.mxu0 %v3030_v57  ;;  %v868_v56 = vld [vmem:[%s4429_s5 + $0x308] sm:$0xff]  ;;  %v871_v57 = vld [vmem:[%s4429_s5 + $0x320] sm:$0xff] }
  0x8d   :  { %721 = vmatprep.subr.bf16.mxu1 %v3216_v0  ;;  %680 = vmatprep.subr.bf16.mxu0 %v3036_v58  ;;  %v3496_v58 = vpack.c.bf16 %v811_v53, %v808_v52  ;;  %v894_v52 = vld [vmem:[%s4429_s5 + $0x3d8] sm:$0xff]  ;;  %v835_v53 = vld [vmem:[%s4429_s5 + $0x200] sm:$0xff] }
  0x90   :  { %722 = vmatpush1.bf16.msra.mxu1 %v3037_v59  ;;  %681 = vmatpush1.bf16.msra.mxu0 %v3034_v60  ;;  %v810_v59 = vld [vmem:[%s4429_s5 + $0x138] sm:$0xff]  ;;  %v3501_v60 = vpack.c.bf16 %v871_v57, %v868_v56  ;;  %v901_v56 = vld [vmem:[%s4429_s5 + $0x410] sm:$0xff]  ;;  %v3647_v57 = vpack.c.bf16 %v828_v43, %v825_v42  ;;  %v3735_v43 = vpack.c.bf16 %v846_v38, %v843_v36  ;;  %v864_v36 = vld [vmem:[%s4429_s5 + $0x2e8] sm:$0xff] }
  0x91   :  { %723 = vmatprep.subr.bf16.mxu1 %v3216_v0  ;;  %682 = vmatprep.subr.bf16.mxu0 %v3040_v61  ;;  %v867_v61 = vld [vmem:[%s4429_s5 + $0x300] sm:$0xff]  ;;  %v853_v42 = vld [vmem:[%s4429_s5 + $0x290] sm:$0xff] }
  0x92   :  { %v821_v38 = vld [vmem:[%s4429_s5 + $0x190] sm:$0xff] }
  0x94   :  { %724 = vmatpush1.bf16.msra.mxu1 %v3041_v62  ;;  %683 = vmatpush1.bf16.msra.mxu0 %v3038_v63  ;;  %v870_v62 = vld [vmem:[%s4429_s5 + $0x318] sm:$0xff] }
  0x95   :  { %725 = vmatprep.subr.bf16.mxu1 %v3216_v0  ;;  %684 = vmatprep.subr.bf16.mxu0 %v3044_v1  ;;  %v814_v63 = vld [vmem:[%s4429_s5 + $0x158] sm:$0xff]  ;;  %v817_v1 = vld [vmem:[%s4429_s5 + $0x170] sm:$0xff] }
  0x98   :  { %726 = vmatpush1.bf16.msra.mxu1 %v3045_v2  ;;  %685 = vmatpush1.bf16.msra.mxu0 %v3042_v3  ;;  %v3515_v2 = vpack.c.bf16 %v870_v62, %v867_v61  ;;  %v874_v3 = vld [vmem:[%s4429_s5 + $0x338] sm:$0xff]  ;;  %v3656_v62 = vpack.c.bf16 %v894_v52, %v891_v51  ;;  %v849_v51 = vld [vmem:[%s4429_s5 + $0x270] sm:$0xff]  ;;  %v852_v52 = vld [vmem:[%s4429_s5 + $0x288] sm:$0xff] }
  0x99   :  { %727 = vmatprep.subr.bf16.mxu1 %v3216_v0  ;;  %686 = vmatprep.subr.bf16.mxu0 %v3048_v4  ;;  %v877_v4 = vld [vmem:[%s4429_s5 + $0x350] sm:$0xff]  ;;  %v834_v61 = vld [vmem:[%s4429_s5 + $0x1f8] sm:$0xff] }
  0x9a   :  { %4448 = vst [vmem:[#allocation16_spill] sm:$0xff] %v3656_v62 }
  0x9c   :  { %728 = vmatpush1.bf16.msra.mxu1 %v3049_v5  ;;  %687 = vmatpush1.bf16.msra.mxu0 %v3046_v6  ;;  %v873_v5 = vld [vmem:[%s4429_s5 + $0x330] sm:$0xff]  ;;  %v3528_v6 = vpack.c.bf16 %v810_v59, %v807_v55  ;;  %v898_v55 = vld [vmem:[%s4429_s5 + $0x3f8] sm:$0xff]  ;;  %v831_v59 = vld [vmem:[%s4429_s5 + $0x1e0] sm:$0xff] }
  0x9d   :  { %729 = vmatprep.subr.bf16.mxu1 %v3216_v0  ;;  %688 = vmatprep.subr.bf16.mxu0 %v3052_v7  ;;  %v813_v7 = vld [vmem:[%s4429_s5 + $0x150] sm:$0xff] }
  0xa0   :  { %730 = vmatpush1.bf16.msra.mxu1 %v3053_v8  ;;  %689 = vmatpush1.bf16.msra.mxu0 %v3050_v9  ;;  %v816_v8 = vld [vmem:[%s4429_s5 + $0x168] sm:$0xff]  ;;  %v3537_v9 = vpack.c.bf16 %v877_v4, %v874_v3  ;;  %v3665_v3 = vpack.c.bf16 %v901_v56, %v898_v55  ;;  %v897_v4 = vld [vmem:[%s4429_s5 + $0x3f0] sm:$0xff]  ;;  %v859_v55 = vld [vmem:[%s4429_s5 + $0x2c0] sm:$0xff]  ;;  %v3754_v56 = vpack.c.bf16 %v852_v52, %v849_v51  ;;  %v4438_v52 = vmov 0.0  }
  0xa1   :  { %731 = vmatprep.subr.bf16.mxu1 %v3216_v0  ;;  %690 = vmatprep.subr.bf16.mxu0 %v3056_v10  ;;  %v876_v10 = vld [vmem:[%s4429_s5 + $0x348] sm:$0xff]  ;;  %v3569_v21 = vpack.c.bf16 %v816_v8, %v813_v7  ;;  %v841_v7 = vld [vmem:[%s4429_s5 + $0x230] sm:$0xff] }
  0xa2   :  { %v3551_v14 = vpack.c.bf16 %v876_v10, %v873_v5  ;;  %4449 = vst [vmem:[#allocation17_spill] sm:$0xff] %v3665_v3  ;;  %v900_v5 = vld [vmem:[%s4429_s5 + $0x408] sm:$0xff]  ;;  %v907_v10 = vld [vmem:[%s4429_s5 + $0x440] sm:$0xff] }
  0xa3   :  { %v904_v8 = vld [vmem:[%s4429_s5 + $0x428] sm:$0xff] }
  0xa4   :  { %732 = vmatpush1.bf16.msra.mxu1 %v3057_v11  ;;  %691 = vmatpush1.bf16.msra.mxu0 %v3054_v12  ;;  %v3543_v11 = vpack.c.bf16 %v817_v1, %v814_v63  ;;  %v820_v12 = vld [vmem:[%s4429_s5 + $0x188] sm:$0xff]  ;;  %v3659_v63 = vpack.c.bf16 %v835_v53, %v832_v47  ;;  %v838_v1 = vld [vmem:[%s4429_s5 + $0x218] sm:$0xff]  ;;  %v3739_v47 = vpack.c.bf16 %v853_v42, %v850_v39 }
  0xa5   :  { %733 = vmatprep.subr.bf16.mxu1 %v3216_v0  ;;  %692 = vmatprep.subr.bf16.mxu0 %v3060_v13  ;;  %v781_v0 = vld [vmem:[%s4429_s5 + $0x50] sm:$0xff]  ;;  %v823_v13 = vld [vmem:[%s4429_s5 + $0x1a0] sm:$0xff]  ;;  %v856_v53 = vld [vmem:[%s4429_s5 + $0x2a8] sm:$0xff] }
  0xa6   :  { %v3397_v25 = vpack.c.bf16 %v781_v0, %v778_v23  ;;  %v886_v0 = vld [vmem:[%s4429_s5 + $0x398] sm:$0xff]  ;;  %v3584_v27 = vpack.c.bf16 %v823_v13, %v820_v12  ;;  %v3683_v12 = vpack.c.bf16 %v834_v61, %v831_v59  ;;  %v837_v13 = vld [vmem:[%s4429_s5 + $0x210] sm:$0xff]  ;;  %v3757_v59 = vpack.c.bf16 %v859_v55, %v856_v53  ;;  %v855_v61 = vld [vmem:[%s4429_s5 + $0x2a0] sm:$0xff] }
  0xa7   :  { %v3590_v29 = vpack.c.bf16 %v889_v26, %v886_v0  ;;  %v906_v0 = vld [vmem:[%s4429_s5 + $0x438] sm:$0xff]  ;;  %v844_v26 = vld [vmem:[%s4429_s5 + $0x248] sm:$0xff] }
  0xa8   :  { %734 = vmatpush1.bf16.msra.mxu1 %v3061_v16  ;;  %693 = vmatpush1.bf16.msra.mxu0 %v3058_v18  ;;  %v883_v16 = vld [vmem:[%s4429_s5 + $0x380] sm:$0xff]  ;;  %v882_v18 = vld [vmem:[%s4429_s5 + $0x378] sm:$0xff]  ;;  %v824_v42 = vld [vmem:[%s4429_s5 + $0x1a8] sm:$0xff] }
  0xa9   :  { %2550 = vmatprep.subr.bf16.mxu0 %v3380_v19  ;;  %2614 = vmatprep.subr.bf16.mxu1 %v3501_v60  ;;  %v3566_v20 = vpack.c.bf16 %v883_v16, %v880_v15  ;;  %v3575_v23 = vpack.c.bf16 %v882_v18, %v879_v17  ;;  %v3689_v15 = vpack.c.bf16 %v900_v5, %v897_v4  ;;  %v840_v17 = vld [vmem:[%s4429_s5 + $0x228] sm:$0xff]  ;;  %v910_v4 = vld [vmem:[%s4429_s5 + $0x458] sm:$0xff] }
  0xaa   :  { %v3692_v16 = vpack.c.bf16 %v841_v7, %v838_v1  ;;  %v3698_v18 = vpack.c.bf16 %v907_v10, %v904_v8  ;;  %v3713_v32 = vpack.c.bf16 %v840_v17, %v837_v13  ;;  %v858_v1 = vld [vmem:[%s4429_s5 + $0x2b8] sm:$0xff]  ;;  %v913_v7 = vld [vmem:[%s4429_s5 + $0x470] sm:$0xff]  ;;  %v912_v10 = vld [vmem:[%s4429_s5 + $0x468] sm:$0xff]  ;;  %v2645_v51 = vpack.c.bf16 %v824_v42, %v821_v38 }
  0xab   :  { %744 = vmatmul.mubr.bf16.vlgmr.msra.gmra.mrb[4].mxu1 %v96_v22  ;;  %703 = vmatmul.mubr.bf16.vlgmr.msra.gmra.mrb[4].mxu0 %v96_v22  ;;  %v819_v22 = vld [vmem:[%s4429_s5 + $0x180] sm:$0xff]  ;;  %4450 = vst [vmem:[#allocation18_spill] sm:$0xff] %v3689_v15  ;;  %v3770_v5 = vpack.c.bf16 %v858_v1, %v855_v61  ;;  %v909_v8 = vld [vmem:[%s4429_s5 + $0x450] sm:$0xff]  ;;  %v3781_v13 = vpack.c.bf16 %v913_v7, %v910_v4 }
  0xac   :  { %2552 = vmatpush1.bf16.msra.mxu0 %v3394_v24  ;;  %2616 = vmatpush1.bf16.msra.mxu1 %v3515_v2  ;;  %v3611_v41 = vpack.c.bf16 %v822_v28, %v819_v22  ;;  %4451 = vst [vmem:[#allocation19_spill] sm:$0xff] %v3698_v18  ;;  %v903_v22 = vld [vmem:[%s4429_s5 + $0x420] sm:$0xff]  ;;  %v3783_v17 = vpack.c.bf16 %v912_v10, %v909_v8 }
  0xad   :  { %2554 = vmatprep.subr.bf16.mxu0 %v3397_v25  ;;  %2618 = vmatprep.subr.bf16.mxu1 %v3537_v9  ;;  %v847_v28 = vld [vmem:[%s4429_s5 + $0x260] sm:$0xff]  ;;  %v3716_v33 = vpack.c.bf16 %v906_v0, %v903_v22  ;;  %4453 = vst [vmem:[#allocation21_spill] sm:$0xff] %v3781_v13  ;;  %v862_v22 = vld [vmem:[%s4429_s5 + $0x2d8] sm:$0xff]  ;;  %v865_v0 = vld [vmem:[%s4429_s5 + $0x2f0] sm:$0xff] }
  0xae   :  { %v3719_v35 = vpack.c.bf16 %v847_v28, %v844_v26  ;;  %4454 = vst [vmem:[#allocation22_spill] sm:$0xff] %v3783_v17  ;;  %v3793_v26 = vpack.c.bf16 %v865_v0, %v862_v22  ;;  %v861_v28 = vld [vmem:[%s4429_s5 + $0x2d0] sm:$0xff]  ;;  %1050 = vmatprep.mubr.f32.mxu1 %v4438_v52  ;;  %v753_v22 = vlaneseq }
  0xaf   :  { %4452 = vst [vmem:[#allocation20_spill] sm:$0xff] %v3716_v33  ;;  %v3805_v39 = vpack.c.bf16 %v864_v36, %v861_v28  ;;  %v751_v36 = vld [vmem:[#allocation8] sm:$0x7] }
  0xb0   :  { %2556 = vmatpush1.bf16.msra.mxu0 %v3412_v30  ;;  %2620 = vmatpush1.bf16.msra.mxu1 %v3551_v14  ;;  %v754_v0 = vshrl.u32 %v753_v22, 7  ;;  %v773_v52 = vld [vmem:[%s4429_s5 + $0x10] sm:$0xff]  ;;  %v827_v22 = vld [vmem:[%s4429_s5 + $0x1c0] sm:$0xff] }
  0xb1   :  { %2558 = vmatprep.subr.bf16.mxu0 %v3415_v31  ;;  %2622 = vmatprep.subr.bf16.mxu1 %v3566_v20 }
  0xb2   :  { %v763_v28 = vsub.s32 2, %v754_v0  ;;  %v759_v38 = vsub.s32 1, %v754_v0  ;;  %v755_v42 = vsub.s32 0, %v754_v0  ;;  %v830_v0 = vld [vmem:[%s4429_s5 + $0x1d8] sm:$0xff] }
  0xb4   :  { %2560 = vmatpush1.bf16.msra.mxu0 %v3425_v34  ;;  %2624 = vmatpush1.bf16.msra.mxu1 %v3575_v23 }
  0xb5   :  { %2562 = vmatprep.subr.bf16.mxu0 %v3434_v37  ;;  %2626 = vmatprep.subr.bf16.mxu1 %v3590_v29 }
  0xb8   :  { %2564 = vmatpush1.bf16.msra.mxu0 %v3442_v40  ;;  %2628 = vmatpush1.bf16.msra.mxu1 %v3620_v45 }
  0xb9   :  { %2566 = vmatprep.subr.bf16.mxu0 %v3455_v44  ;;  %2630 = vmatprep.subr.bf16.mxu1 %v3629_v50  ;;  %v2649_v50 = vpack.c.bf16 %v830_v0, %v827_v22  ;;  %v791_v22 = vld [vmem:[%s4429_s5 + $0xa0] sm:$0xff]  ;;  %v794_v0 = vld [vmem:[%s4429_s5 + $0xb8] sm:$0xff] }
  0xbc   :  { %2568 = vmatpush1.bf16.msra.mxu0 %v3466_v48  ;;  %2632 = vmatpush1.bf16.msra.mxu1 %v3656_v62 }
  0xbd   :  { %2570 = vmatprep.subr.bf16.mxu0 %v3468_v49  ;;  %2634 = vmatprep.subr.bf16.mxu1 %v3665_v3 }
  0xc0   :  { %2572 = vmatpush1.bf16.msra.mxu0 %v3484_v54  ;;  %2636 = vmatpush1.bf16.msra.mxu1 %v3689_v15 }
  0xc1   :  { %2574 = vmatprep.subr.bf16.mxu0 %v3496_v58  ;;  %2638 = vmatprep.subr.bf16.mxu1 %v3698_v18 }
  0xc4   :  { %2576 = vmatpush1.bf16.msra.mxu0 %v3528_v6  ;;  %2640 = vmatpush1.bf16.msra.mxu1 %v3716_v33 }
  0xc5   :  { %2578 = vmatprep.subr.bf16.mxu0 %v3543_v11  ;;  %2642 = vmatprep.subr.bf16.mxu1 %v3781_v13  ;;  %v756_v13 = vrot.slane %v751_v36, %v755_v42 }
  0xc8   :  { %2580 = vmatpush1.bf16.msra.mxu0 %v3569_v21  ;;  %2644 = vmatpush1.bf16.msra.mxu1 %v3783_v17  ;;  %v764_v17 = vrot.slane %v751_v36, %v763_v28 }
  0xc9   :  { %2582 = vmatprep.subr.bf16.mxu0 %v3584_v27  ;;  %2646 = vmatprep.subr.bf16.mxu1 %v2645_v51 }
  0xcc   :  { %2584 = vmatpush1.bf16.msra.mxu0 %v3611_v41 }
  0xcd   :  { %2586 = vmatprep.subr.bf16.mxu0 %v3623_v46 }
  0xd0   :  { %2588 = vmatpush1.bf16.msra.mxu0 %v3647_v57 }
  0xd1   :  { %2590 = vmatprep.subr.bf16.mxu0 %v3659_v63 }
  0xd4   :  { %2592 = vmatpush1.bf16.msra.mxu0 %v3683_v12 }
  0xd5   :  { %2594 = vmatprep.subr.bf16.mxu0 %v3692_v16 }
  0xd8   :  { %2596 = vmatpush1.bf16.msra.mxu0 %v3713_v32 }
  0xd9   :  { %2598 = vmatprep.subr.bf16.mxu0 %v3719_v35 }
  0xdc   :  { %2600 = vmatpush1.bf16.msra.mxu0 %v3735_v43 }
  0xdd   :  { %2602 = vmatprep.subr.bf16.mxu0 %v3739_v47 }
  0xe0   :  { %2604 = vmatpush1.bf16.msra.mxu0 %v3754_v56 }
  0xe1   :  { %2606 = vmatprep.subr.bf16.mxu0 %v3757_v59 }
  0xe4   :  { %2608 = vmatpush1.bf16.msra.mxu0 %v3770_v5 }
  0xe5   :  { %2610 = vmatprep.subr.bf16.mxu0 %v3793_v26 }
  0xe8   :  { %2612 = vmatpush1.bf16.msra.mxu0 %v3805_v39 }
  0xe9   :  { %2798 = vmatprep.subr.bf16.mxu0 %v2645_v51  ;;  %v776_v51 = vld [vmem:[%s4429_s5 + $0x28] sm:$0xff] }
  0xea   :  { %v2647_v15 = vpack.c.bf16 %v776_v51, %v773_v52  ;;  %v839_v51 = vld [vmem:[%s4429_s5 + $0x220] sm:$0xff] }
 0x14e   :  { %v469_v53 = vpop.f32.mrb[0].mxu1  ;;  %v428_v61 = vpop.f32.mrb[0].mxu0 }
 0x14f   :  { %v471_v55 = vpop.f32.mrb[1].mxu1  ;;  %v430_v4 = vpop.f32.mrb[1].mxu0 }
 0x150   :  { %v472_v1 = vpop.f32.mrb[2].mxu1  ;;  %v432_v8 = vpop.f32.mrb[2].mxu0 }
 0x151   :  { %v473_v7 = vpop.f32.mrb[3].mxu1  ;;  %v433_v10 = vpop.f32.mrb[3].mxu0 }
 0x152   :  { %v760_v10 = vrot.slane %v751_v36, %v759_v38  ;;  %v779_v38 = vld [vmem:[%s4429_s5 + $0x40] sm:$0xff] }
 0x17e   :  { %v745_v55 = vpop.f32.mrb[4].mxu1  ;;  %v704_v7 = vpop.f32.mrb[4].mxu0 }
 0x17f   :  { %v746_v1 = vadd.f32 %v745_v55, %v469_v53  ;;  %v747_v8 = vpop.f32.mrb[5].mxu1  ;;  %v705_v28 = vadd.f32 %v704_v7, %v428_v61  ;;  %v706_v33 = vpop.f32.mrb[5].mxu0  ;;  %v782_v55 = vld [vmem:[%s4429_s5 + $0x58] sm:$0xff]  ;;  %v833_v61 = vld [vmem:[%s4429_s5 + $0x1f0] sm:$0xff] }
 0x180   :  { %v748_v18 = vpop.f32.mrb[6].mxu1  ;;  %v707_v62 = vadd.f32 %v706_v33, %v430_v4  ;;  %v708_v8 = vpop.f32.mrb[6].mxu0  ;;  %v2651_v4 = vpack.c.bf16 %v782_v55, %v779_v38  ;;  %v797_v38 = vld [vmem:[%s4429_s5 + $0xd0] sm:$0xff]  ;;  %v800_v55 = vld [vmem:[%s4429_s5 + $0xe8] sm:$0xff] }
 0x181   :  { %v3825_v3 = vadd.f32 %v764_v17, %v746_v1  ;;  %v749_v53 = vpop.f32.mrb[7].mxu1  ;;  %v836_v18 = vld [vmem:[%s4429_s5 + $0x208] sm:$0xff]  ;;  %v709_v33 = vpop.f32.mrb[7].mxu0  ;;  %v3842_v52 = vadd.f32 %v756_v13, %v705_v28  ;;  %v842_v1 = vld [vmem:[%s4429_s5 + $0x238] sm:$0xff]  ;;  %v845_v28 = vld [vmem:[%s4429_s5 + $0x250] sm:$0xff] }
 0x182   :  { %v3839_v17 = vadd.f32 %v760_v10, %v707_v62  ;;  %v2653_v42 = vpack.c.bf16 %v836_v18, %v833_v61  ;;  %v785_v62 = vld [vmem:[%s4429_s5 + $0x70] sm:$0xff]  ;;  %v788_v13 = vld [vmem:[%s4429_s5 + $0x88] sm:$0xff]  ;;  %v2657_v10 = vpack.c.bf16 %v842_v1, %v839_v51  ;;  %v851_v8 = vld [vmem:[%s4429_s5 + $0x280] sm:$0xff]  ;;  %v2663_v18 = vpack.c.bf16 %v800_v55, %v797_v38 }
 0x183   :  { %1051 = vmatmul.mubr.f32.vlgmr.msra.gmra.mrb[8].mxu1 %v3825_v3  ;;  %v2655_v7 = vpack.c.bf16 %v788_v13, %v785_v62  ;;  %v854_v61 = vld [vmem:[%s4429_s5 + $0x298] sm:$0xff]  ;;  %v857_v62 = vld [vmem:[%s4429_s5 + $0x2b0] sm:$0xff]  ;;  %v860_v13 = vld [vmem:[%s4429_s5 + $0x2c8] sm:$0xff] }
 0x184   :  { %2648 = vmatpush3.bf16.msra.mxu1 %v2647_v15  ;;  %979 = vmatprep.mubr.f32.mxu0 %v3839_v17  ;;  %v3848_v36 = vmul.f32 %v3839_v17, %v3839_v17  ;;  %v2665_v33 = vpack.c.bf16 %v854_v61, %v851_v8  ;;  %v2669_v1 = vpack.c.bf16 %v860_v13, %v857_v62  ;;  %v869_v55 = vld [vmem:[%s4429_s5 + $0x310] sm:$0xff]  ;;  %v872_v8 = vld [vmem:[%s4429_s5 + $0x328] sm:$0xff] }
 0x185   :  { %1121 = vmatprep.mubr.f32.mxu1 %v3839_v17  ;;  %980 = vmatmul.mubr.f32.vlgmr.msra.gmra.mrb[8].mxu0 %v3842_v52  ;;  %v2678_v61 = vpack.c.bf16 %v872_v8, %v869_v55  ;;  %v881_v13 = vld [vmem:[%s4429_s5 + $0x370] sm:$0xff] }
 0x186   :  { %2650 = vmatprep.subr.bf16.mxu1 %v2649_v50  ;;  %2800 = vmatpush3.bf16.msra.mxu0 %v2647_v15  ;;  %v848_v15 = vld [vmem:[%s4429_s5 + $0x268] sm:$0xff]  ;;  %v905_v8 = vld [vmem:[%s4429_s5 + $0x430] sm:$0xff] }
 0x187   :  { %1406 = vmatprep.mubr.f32.mxu0 %v3848_v36  ;;  %2802 = vmatprep.subr.bf16.mxu0 %v2649_v50  ;;  %v2659_v50 = vpack.c.bf16 %v794_v0, %v791_v22  ;;  %v2661_v53 = vpack.c.bf16 %v848_v15, %v845_v28  ;;  %v863_v22 = vld [vmem:[%s4429_s5 + $0x2e0] sm:$0xff]  ;;  %v866_v0 = vld [vmem:[%s4429_s5 + $0x2f8] sm:$0xff] }
 0x188   :  { %2652 = vmatpush3.bf16.msra.mxu1 %v2651_v4  ;;  %v2673_v15 = vpack.c.bf16 %v866_v0, %v863_v22  ;;  %v890_v22 = vld [vmem:[%s4429_s5 + $0x3b8] sm:$0xff] }
 0x189   :  { %2654 = vmatprep.subr.bf16.mxu1 %v2653_v42 }
 0x18a   :  { %2804 = vmatpush3.bf16.msra.mxu0 %v2651_v4  ;;  %v803_v4 = vld [vmem:[%s4429_s5 + $0x100] sm:$0xff] }
 0x18b   :  { %2806 = vmatprep.subr.bf16.mxu0 %v2653_v42  ;;  %v806_v42 = vld [vmem:[%s4429_s5 + $0x118] sm:$0xff] }
 0x18c   :  { %2656 = vmatpush3.bf16.msra.mxu1 %v2655_v7  ;;  %v2667_v51 = vpack.c.bf16 %v806_v42, %v803_v4  ;;  %v878_v4 = vld [vmem:[%s4429_s5 + $0x358] sm:$0xff]  ;;  %v3934_v42 = vmul.f32 %v3842_v52, %v3842_v52 }
 0x18d   :  { %2658 = vmatprep.subr.bf16.mxu1 %v2657_v10 }
 0x18e   :  { %2808 = vmatpush3.bf16.msra.mxu0 %v2655_v7  ;;  %v809_v7 = vld [vmem:[%s4429_s5 + $0x130] sm:$0xff] }
 0x18f   :  { %2810 = vmatprep.subr.bf16.mxu0 %v2657_v10  ;;  %v812_v10 = vld [vmem:[%s4429_s5 + $0x148] sm:$0xff] }
 0x190   :  { %2660 = vmatpush3.bf16.msra.mxu1 %v2659_v50  ;;  %v2671_v28 = vpack.c.bf16 %v812_v10, %v809_v7  ;;  %v887_v10 = vld [vmem:[%s4429_s5 + $0x3a0] sm:$0xff] }
 0x191   :  { %2662 = vmatprep.subr.bf16.mxu1 %v2661_v53  ;;  %v2687_v0 = vpack.c.bf16 %v890_v22, %v887_v10  ;;  %v3085_v10 = vld [vmem:[%s4430_s6 + $0x38] sm:$0xff]  }
 0x192   :  { %2812 = vmatpush3.bf16.msra.mxu0 %v2659_v50  ;;  %v815_v50 = vld [vmem:[%s4429_s5 + $0x160] sm:$0xff] }
 0x193   :  { %2814 = vmatprep.subr.bf16.mxu0 %v2661_v53  ;;  %v818_v53 = vld [vmem:[%s4429_s5 + $0x178] sm:$0xff] }
 0x194   :  { %2664 = vmatpush3.bf16.msra.mxu1 %v2663_v18  ;;  %v2675_v38 = vpack.c.bf16 %v818_v53, %v815_v50  ;;  %v899_v53 = vld [vmem:[%s4429_s5 + $0x400] sm:$0xff] }
 0x195   :  { %2666 = vmatprep.subr.bf16.mxu1 %v2665_v33 }
 0x196   :  { %2816 = vmatpush3.bf16.msra.mxu0 %v2663_v18  ;;  %v3218_v18 = vmov 0.0|0.0  }
 0x197   :  { %2818 = vmatprep.subr.bf16.mxu0 %v2665_v33  ;;  %v875_v33 = vld [vmem:[%s4429_s5 + $0x340] sm:$0xff] }
 0x198   :  { %2668 = vmatpush3.bf16.msra.mxu1 %v2667_v51  ;;  %v2681_v62 = vpack.c.bf16 %v878_v4, %v875_v33  ;;  %v911_v4 = vld [vmem:[%s4429_s5 + $0x460] sm:$0xff] }
 0x199   :  { %2670 = vmatprep.subr.bf16.mxu1 %v2669_v1 }
 0x19a   :  { %2820 = vmatpush3.bf16.msra.mxu0 %v2667_v51  ;;  %v884_v51 = vld [vmem:[%s4429_s5 + $0x388] sm:$0xff] }
 0x19b   :  { %2822 = vmatprep.subr.bf16.mxu0 %v2669_v1  ;;  %v4455_v1 = vmov 0.0   ;;  %v2684_v7 = vpack.c.bf16 %v884_v51, %v881_v13  ;;  %v1199_v51 = vmul.f32 %v3825_v3, %v3825_v3 }
 0x19c   :  { %2672 = vmatpush3.bf16.msra.mxu1 %v2671_v28 }
 0x19d   :  { %2674 = vmatprep.subr.bf16.mxu1 %v2673_v15 }
 0x19e   :  { %2824 = vmatpush3.bf16.msra.mxu0 %v2671_v28  ;;  %v893_v28 = vld [vmem:[%s4429_s5 + $0x3d0] sm:$0xff] }
 0x19f   :  { %2826 = vmatprep.subr.bf16.mxu0 %v2673_v15  ;;  %v896_v15 = vld [vmem:[%s4429_s5 + $0x3e8] sm:$0xff] }
 0x1a0   :  { %2676 = vmatpush3.bf16.msra.mxu1 %v2675_v38  ;;  %v2690_v50 = vpack.c.bf16 %v896_v15, %v893_v28 }
 0x1a1   :  { %2677 = vmatprep.subr.bf16.mxu1 %v3218_v18 }
 0x1a2   :  { %2828 = vmatpush3.bf16.msra.mxu0 %v2675_v38  ;;  %v902_v38 = vld [vmem:[%s4429_s5 + $0x418] sm:$0xff] }
 0x1a3   :  { %1122 = vmatmul.mubr.f32.vlgmr.msra.gmra.mrb[10].mxu1 %v3842_v52  ;;  %2829 = vmatprep.subr.bf16.mxu0 %v3218_v18  ;;  %v2693_v55 = vpack.c.bf16 %v902_v38, %v899_v53 }
 0x1a4   :  { %2679 = vmatpush3.bf16.msra.mxu1 %v2678_v61  ;;  %2464 = vmatprep.mubr.msk.f32.mxu1 %vm3219_vm1, %v4455_v1 }
 0x1a5   :  { %2680 = vmatprep.subr.bf16.mxu1 %v3218_v18  ;;  %1407 = vmatmul.mubr.f32.vlgmr.msra.gmra.mrb[10].mxu0 %v3934_v42 }
 0x1a6   :  { %2831 = vmatpush3.bf16.msra.mxu0 %v2678_v61  ;;  %2499 = vmatprep.mubr.msk.f32.mxu0 %vm3219_vm1, %v4455_v1  ;;  %v908_v61 = vld [vmem:[%s4429_s5 + $0x448] sm:$0xff] }
 0x1a7   :  { %2832 = vmatprep.subr.bf16.mxu0 %v3218_v18  ;;  %v2696_v33 = vpack.c.bf16 %v908_v61, %v905_v8 }
 0x1a8   :  { %2682 = vmatpush3.bf16.msra.mxu1 %v2681_v62 }
 0x1a9   :  { %2683 = vmatprep.subr.bf16.mxu1 %v3218_v18 }
 0x1aa   :  { %2834 = vmatpush3.bf16.msra.mxu0 %v2681_v62  ;;  %v914_v62 = vld [vmem:[%s4429_s5 + $0x478] sm:$0xff] }
 0x1ab   :  { %2835 = vmatprep.subr.bf16.mxu0 %v3218_v18  ;;  %v2699_v13 = vpack.c.bf16 %v914_v62, %v911_v4 }
 0x1ac   :  { %2685 = vmatpush3.bf16.msra.mxu1 %v2684_v7 }
 0x1ad   :  { %2686 = vmatprep.subr.bf16.mxu1 %v3218_v18 }
 0x1ae   :  { %2837 = vmatpush3.bf16.msra.mxu0 %v2684_v7  ;;  %v3084_v7 = vld [vmem:[%s4430_s6 + $0x78] sm:$0xff]  }
 0x1af   :  { %2838 = vmatprep.subr.bf16.mxu0 %v3218_v18 }
 0x1b0   :  { %2688 = vmatpush3.bf16.msra.mxu1 %v2687_v0 }
 0x1b1   :  { %2689 = vmatprep.subr.bf16.mxu1 %v3218_v18 }
 0x1b2   :  { %2840 = vmatpush3.bf16.msra.mxu0 %v2687_v0 }
 0x1b3   :  { %2841 = vmatprep.subr.bf16.mxu0 %v3218_v18 }
 0x1b4   :  { %2691 = vmatpush3.bf16.msra.mxu1 %v2690_v50 }
 0x1b5   :  { %2692 = vmatprep.subr.bf16.mxu1 %v3218_v18 }
 0x1b6   :  { %2843 = vmatpush3.bf16.msra.mxu0 %v2690_v50 }
 0x1b7   :  { %2844 = vmatprep.subr.bf16.mxu0 %v3218_v18 }
 0x1b8   :  { %2694 = vmatpush3.bf16.msra.mxu1 %v2693_v55 }
 0x1b9   :  { %2695 = vmatprep.subr.bf16.mxu1 %v3218_v18 }
 0x1ba   :  { %2846 = vmatpush3.bf16.msra.mxu0 %v2693_v55 }
 0x1bb   :  { %2847 = vmatprep.subr.bf16.mxu0 %v3218_v18 }
 0x1bc   :  { %2697 = vmatpush3.bf16.msra.mxu1 %v2696_v33 }
 0x1bd   :  { %2698 = vmatprep.subr.bf16.mxu1 %v3218_v18 }
 0x1be   :  { %2849 = vmatpush3.bf16.msra.mxu0 %v2696_v33 }
 0x1bf   :  { %2850 = vmatprep.subr.bf16.mxu0 %v3218_v18 }
 0x1c0   :  { %2700 = vmatpush3.bf16.msra.mxu1 %v2699_v13 }
 0x1c1   :  { %2702 = vmatprep.subr.bf16.mxu1 %v3380_v19  ;;  %v4456_v19 = vld [vmem:[#allocation15_spill] sm:$0xff] }
 0x1c2   :  { %2852 = vmatpush3.bf16.msra.mxu0 %v2699_v13 }
 0x1c3   :  { %2465 = vmatmul.mubr.f32.vlgmr.msra.gmra.mrb[12].mxu1 %v3825_v3 }
 0x1c4   :  { %2704 = vmatpush1.bf16.msra.mxu1 %v3394_v24  ;;  %1264 = vmatprep.mubr.f32.mxu1 %v3848_v36  ;;  %v4457_v24 = vld [vmem:[#allocation16_spill] sm:$0xff]  ;;  %v3082_v36 = vld [vmem:[%s4430_s6 + $0x70] sm:$0xff]  }
 0x1c5   :  { %2706 = vmatprep.subr.bf16.mxu1 %v3397_v25  ;;  %2500 = vmatmul.mubr.f32.vlgmr.msra.gmra.mrb[12].mxu0 %v1199_v51  ;;  %v4458_v25 = vld [vmem:[#allocation17_spill] sm:$0xff] }
 0x1c8   :  { %2708 = vmatpush1.bf16.msra.mxu1 %v3412_v30  ;;  %v4459_v30 = vld [vmem:[#allocation18_spill] sm:$0xff] }
 0x1c9   :  { %2710 = vmatprep.subr.bf16.mxu1 %v3415_v31  ;;  %v4460_v31 = vld [vmem:[#allocation19_spill] sm:$0xff] }
 0x1cc   :  { %2712 = vmatpush1.bf16.msra.mxu1 %v3425_v34  ;;  %v4461_v34 = vld [vmem:[#allocation20_spill] sm:$0xff] }
 0x1cd   :  { %2714 = vmatprep.subr.bf16.mxu1 %v3434_v37  ;;  %v4462_v37 = vld [vmem:[#allocation21_spill] sm:$0xff] }
 0x1d0   :  { %2716 = vmatpush1.bf16.msra.mxu1 %v3442_v40  ;;  %v4463_v40 = vld [vmem:[#allocation22_spill] sm:$0xff] }
 0x1d1   :  { %2718 = vmatprep.subr.bf16.mxu1 %v3455_v44  ;;  %v3062_v44 = vld [vmem:[%s4430_s6 + $0x80] sm:$0xff]  }
 0x1d4   :  { %2720 = vmatpush1.bf16.msra.mxu1 %v3466_v48  ;;  %v3063_v48 = vld [vmem:[%s4430_s6 + $0x88] sm:$0xff]  }
 0x1d5   :  { %2722 = vmatprep.subr.bf16.mxu1 %v3468_v49  ;;  %v3064_v49 = vld [vmem:[%s4430_s6 + $0x90] sm:$0xff]  }
 0x1d8   :  { %2724 = vmatpush1.bf16.msra.mxu1 %v3484_v54  ;;  %v3065_v54 = vld [vmem:[%s4430_s6 + $0x98] sm:$0xff]  }
 0x1d9   :  { %2726 = vmatprep.subr.bf16.mxu1 %v3496_v58  ;;  %v3066_v58 = vld [vmem:[%s4430_s6 + $0xa0] sm:$0xff]  }
 0x1dc   :  { %2728 = vmatpush1.bf16.msra.mxu1 %v3528_v6  ;;  %v3072_v6 = vld [vmem:[%s4430_s6 + $0x48] sm:$0xff]  }
 0x1dd   :  { %2730 = vmatprep.subr.bf16.mxu1 %v3543_v11  ;;  %v3073_v11 = vld [vmem:[%s4430_s6 + $0x8] sm:$0xff]  }
 0x1e0   :  { %2732 = vmatpush1.bf16.msra.mxu1 %v3569_v21 }
 0x1e1   :  { %2734 = vmatprep.subr.bf16.mxu1 %v3584_v27 }
 0x1e4   :  { %2736 = vmatpush1.bf16.msra.mxu1 %v3611_v41 }
 0x1e5   :  { %2738 = vmatprep.subr.bf16.mxu1 %v3623_v46 }
 0x1e8   :  { %2740 = vmatpush1.bf16.msra.mxu1 %v3647_v57  ;;  %v3074_v57 = vld [vmem:[%s4430_s6 + $0x50] sm:$0xff]  }
 0x1e9   :  { %2742 = vmatprep.subr.bf16.mxu1 %v3659_v63 }
 0x1ec   :  { %2744 = vmatpush1.bf16.msra.mxu1 %v3683_v12  ;;  %v3075_v12 = vld [vmem:[%s4430_s6 + $0x10] sm:$0xff]  }
 0x1ed   :  { %2746 = vmatprep.subr.bf16.mxu1 %v3692_v16 }
 0x1f0   :  { %2748 = vmatpush1.bf16.msra.mxu1 %v3713_v32 }
 0x1f1   :  { %2750 = vmatprep.subr.bf16.mxu1 %v3719_v35 }
 0x1f4   :  { %2752 = vmatpush1.bf16.msra.mxu1 %v3735_v43  ;;  %v3076_v43 = vld [vmem:[%s4430_s6 + $0x58] sm:$0xff]  }
 0x1f5   :  { %2754 = vmatprep.subr.bf16.mxu1 %v3739_v47 }
 0x1f8   :  { %2756 = vmatpush1.bf16.msra.mxu1 %v3754_v56  ;;  %v3077_v56 = vld [vmem:[%s4430_s6 + $0x18] sm:$0xff]  }
 0x1f9   :  { %2758 = vmatprep.subr.bf16.mxu1 %v3757_v59  ;;  %v3078_v59 = vld [vmem:[%s4430_s6 + $0x60] sm:$0xff]  }
 0x1fc   :  { %2760 = vmatpush1.bf16.msra.mxu1 %v3770_v5  ;;  %v3079_v5 = vld [vmem:[%s4430_s6 + $0x20] sm:$0xff]  }
 0x1fd   :  { %2762 = vmatprep.subr.bf16.mxu1 %v3793_v26  ;;  %v3080_v26 = vld [vmem:[%s4430_s6 + $0x68] sm:$0xff]  }
 0x200   :  { %2764 = vmatpush1.bf16.msra.mxu1 %v3805_v39  ;;  %v3081_v39 = vld [vmem:[%s4430_s6 + $0x28] sm:$0xff]  }
 0x201   :  { %2766 = vmatprep.subr.bf16.mxu1 %v3501_v60  ;;  %v3070_v60 = vld [vmem:[%s4430_s6 + $0x40] sm:$0xff]  }
 0x202   :  { %2388 = vmatprep.subr.bf16.mxu0 %v3070_v60 }
 0x203   :  { %1265 = vmatmul.mubr.f32.vlgmr.msra.gmra.mrb[14].mxu1 %v3934_v42  ;;  %v3083_v42 = vld [vmem:[%s4430_s6 + $0x30] sm:$0xff]  }
 0x204   :  { %2768 = vmatpush1.bf16.msra.mxu1 %v3515_v2  ;;  %1335 = vmatprep.mubr.f32.mxu1 %v4455_v1  ;;  %v3071_v2 = vld [vmem:[%s4430_s6] sm:$0xff]  }
 0x205   :  { %2770 = vmatprep.subr.bf16.mxu1 %v3537_v9  ;;  %v3067_v9 = vld [vmem:[%s4430_s6 + $0xa8] sm:$0xff]   ;;  %2389 = vmatpush3.bf16.msra.mxu0 %v3071_v2 }
 0x206   :  { %2390 = vmatprep.subr.bf16.mxu0 %v3072_v6  ;;  %v1789_v6 = vld [vmem:[%s4432_s8 + $0x8] sm:$0xff] }
 0x208   :  { %2772 = vmatpush1.bf16.msra.mxu1 %v3551_v14  ;;  %v3068_v14 = vld [vmem:[%s4430_s6 + $0xb0] sm:$0xff]  }
 0x209   :  { %2774 = vmatprep.subr.bf16.mxu1 %v3566_v20  ;;  %2391 = vmatpush3.bf16.msra.mxu0 %v3073_v11  ;;  %v3069_v20 = vld [vmem:[%s4430_s6 + $0xb8] sm:$0xff]   ;;  %v1888_v11 = vld [vmem:[%s4433_s9 + $0x8] sm:$0xff] }
 0x20a   :  { %2392 = vmatprep.subr.bf16.mxu0 %v3074_v57  ;;  %v1795_v57 = vld [vmem:[%s4432_s8 + $0x38] sm:$0xff] }
 0x20c   :  { %2776 = vmatpush1.bf16.msra.mxu1 %v3575_v23 }
 0x20d   :  { %2778 = vmatprep.subr.bf16.mxu1 %v3590_v29  ;;  %2393 = vmatpush3.bf16.msra.mxu0 %v3075_v12  ;;  %v1894_v12 = vld [vmem:[%s4433_s9 + $0x38] sm:$0xff] }
 0x20e   :  { %2394 = vmatprep.subr.bf16.mxu0 %v3076_v43  ;;  %v1792_v43 = vld [vmem:[%s4432_s8 + $0x20] sm:$0xff] }
 0x210   :  { %2780 = vmatpush1.bf16.msra.mxu1 %v3620_v45 }
 0x211   :  { %2782 = vmatprep.subr.bf16.mxu1 %v4456_v19  ;;  %2395 = vmatpush3.bf16.msra.mxu0 %v3077_v56 }
 0x212   :  { %2396 = vmatprep.subr.bf16.mxu0 %v3078_v59 }
 0x214   :  { %2784 = vmatpush1.bf16.msra.mxu1 %v4457_v24 }
 0x215   :  { %2786 = vmatprep.subr.bf16.mxu1 %v4458_v25  ;;  %2397 = vmatpush3.bf16.msra.mxu0 %v3079_v5  ;;  %v1794_v5 = vld [vmem:[%s4432_s8 + $0x30] sm:$0xff] }
 0x216   :  { %2398 = vmatprep.subr.bf16.mxu0 %v3080_v26  ;;  %v1893_v26 = vld [vmem:[%s4433_s9 + $0x30] sm:$0xff] }
 0x218   :  { %2788 = vmatpush1.bf16.msra.mxu1 %v4459_v30 }
 0x219   :  { %2790 = vmatprep.subr.bf16.mxu1 %v4460_v31  ;;  %2399 = vmatpush3.bf16.msra.mxu0 %v3081_v39  ;;  %v1797_v39 = vld [vmem:[%s4432_s8 + $0x48] sm:$0xff] }
 0x21a   :  { %2400 = vmatprep.subr.bf16.mxu0 %v3082_v36 }
 0x21c   :  { %2792 = vmatpush1.bf16.msra.mxu1 %v4461_v34 }
 0x21d   :  { %2794 = vmatprep.subr.bf16.mxu1 %v4462_v37  ;;  %2401 = vmatpush3.bf16.msra.mxu0 %v3083_v42  ;;  %v1799_v42 = vld [vmem:[%s4432_s8 + $0x58] sm:$0xff] }
 0x21e   :  { %2402 = vmatprep.subr.bf16.mxu0 %v3084_v7  ;;  %v1896_v7 = vld [vmem:[%s4433_s9 + $0x48] sm:$0xff] }
 0x220   :  { %2796 = vmatpush1.bf16.msra.mxu1 %v4463_v40 }
 0x221   :  { %2502 = vmatprep.subr.bf16.mxu1 %v4455_v1  ;;  %2403 = vmatpush3.bf16.msra.mxu0 %v3085_v10  ;;  %v1898_v10 = vld [vmem:[%s4433_s9 + $0x58] sm:$0xff] }
 0x223   :  { %1336 = vmatmul.mubr.f32.vlgmr.msra.gmra.mrb[14].mxu1 %v1199_v51 }
 0x224   :  { %2503 = vmatpush3.bf16.msra.mxu1 %v3062_v44  ;;  %2518 = vmatprep.mubr.msk.bf16.mxu1 %vm3219_vm1, %v4455_v1 }
 0x225   :  { %2504 = vmatprep.subr.bf16.mxu1 %v4455_v1 }
 0x228   :  { %2505 = vmatpush3.bf16.msra.mxu1 %v3063_v48 }
 0x229   :  { %2506 = vmatprep.subr.bf16.mxu1 %v4455_v1 }
 0x22c   :  { %2507 = vmatpush3.bf16.msra.mxu1 %v3064_v49 }
 0x22d   :  { %2508 = vmatprep.subr.bf16.mxu1 %v4455_v1 }
 0x230   :  { %2509 = vmatpush3.bf16.msra.mxu1 %v3065_v54 }
 0x231   :  { %2510 = vmatprep.subr.bf16.mxu1 %v4455_v1 }
 0x234   :  { %2511 = vmatpush3.bf16.msra.mxu1 %v3066_v58 }
 0x235   :  { %2512 = vmatprep.subr.bf16.mxu1 %v4455_v1 }
 0x238   :  { %2513 = vmatpush3.bf16.msra.mxu1 %v3067_v9  ;;  %v1791_v9 = vld [vmem:[%s4432_s8 + $0x18] sm:$0xff] }
 0x239   :  { %2514 = vmatprep.subr.bf16.mxu1 %v4455_v1 }
 0x23c   :  { %2515 = vmatpush3.bf16.msra.mxu1 %v3068_v14  ;;  %v2853_v14 = vpack.c.bf16 %v1791_v9, %v1789_v6  ;;  %v1905_v6 = vld [vmem:[%s4433_s9 + $0x90] sm:$0xff] }
 0x23d   :  { %2516 = vmatprep.subr.bf16.mxu1 %v4455_v1 }
 0x23e   :  { %2854 = vmatprep.subr.bf16.mxu0 %v2853_v14  ;;  %v1908_v14 = vld [vmem:[%s4433_s9 + $0xa8] sm:$0xff] }
 0x240   :  { %2517 = vmatpush3.bf16.msra.mxu1 %v3069_v20  ;;  %v1788_v20 = vld [vmem:[%s4432_s8] sm:$0xff] }
 0x256   :  { %v1052_v21 = vpop.f32.mrb[8].mxu1 }
 0x257   :  { %v1054_v23 = vpop.f32.mrb[9].mxu1 }
 0x258   :  { %v981_v27 = vpop.f32.mrb[8].mxu0 }
 0x259   :  { %v4092_v29 = vadd.f32 %v1052_v21, %v981_v27  ;;  %v983_v41 = vpop.f32.mrb[9].mxu0  ;;  %v1790_v21 = vld [vmem:[%s4432_s8 + $0x10] sm:$0xff] }
 0x25a   :  { %v4094_v45 = vadd.f32 %v1054_v23, %v983_v41  ;;  %v1889_v41 = vld [vmem:[%s4433_s9 + $0x10] sm:$0xff] }
 0x25b   :  { %v1482_v19 = vmul.f32 %v4092_v29, %v4092_v29  ;;  %v1491_v48 = vsub.f32 %v3842_v52, %v4092_v29  ;;  %v1887_v29 = vld [vmem:[%s4433_s9] sm:$0xff] }
 0x25c   :  { %v1483_v25 = vmul.f32 %v4094_v45, %v4094_v45  ;;  %v1492_v54 = vsub.f32 %v3839_v17, %v4094_v45  ;;  %v1890_v17 = vld [vmem:[%s4433_s9 + $0x18] sm:$0xff]  ;;  %v1793_v45 = vld [vmem:[%s4432_s8 + $0x28] sm:$0xff] }
 0x25d   :  { %v2877_v27 = vpack.c.bf16 %v1890_v17, %v1888_v11  ;;  %v2857_v59 = vpack.c.bf16 %v1795_v57, %v1793_v45  ;;  %v1809_v11 = vld [vmem:[%s4432_s8 + $0xa8] sm:$0xff]  ;;  %v1909_v45 = vld [vmem:[%s4433_s9 + $0xb0] sm:$0xff] }
 0x25f   :  { %2878 = vmatprep.subr.bf16.mxu1 %v2877_v27 }
 0x276   :  { %v2316_v46 = vpop.f32.mrb[10].mxu1 }
 0x277   :  { %v2317_v63 = vpop.f32.mrb[11].mxu1 }
 0x278   :  { %v2318_v16 = vadd.f32 %v2317_v63, %v2316_v46  ;;  %v2368_v32 = vpop.f32.mrb[10].mxu0  ;;  %v2879_v46 = vpack.c.bf16 %v1889_v41, %v1887_v29  ;;  %v1892_v63 = vld [vmem:[%s4433_s9 + $0x28] sm:$0xff]  ;;  %v1907_v41 = vld [vmem:[%s4433_s9 + $0xa0] sm:$0xff] }
 0x279   :  { %v2369_v35 = vpop.f32.mrb[11].mxu0 }
 0x27a   :  { %v2370_v47 = vadd.f32 %v2369_v35, %v2368_v32  ;;  %v2855_v32 = vpack.c.bf16 %v1790_v21, %v1788_v20  ;;  %v2881_v35 = vpack.c.bf16 %v1894_v12, %v1892_v63  ;;  %v1910_v20 = vld [vmem:[%s4433_s9 + $0xb8] sm:$0xff]  ;;  %v1808_v21 = vld [vmem:[%s4432_s8 + $0xa0] sm:$0xff] }
 0x27b   :  { %v2897_v27 = vpack.c.bf16 %v1910_v20, %v1908_v14  ;;  %v1987_v14 = vld [vmem:[%s4434_s10 + $0x18] sm:$0xff]  ;;  %v1988_v20 = vld [vmem:[%s4434_s10 + $0x20] sm:$0xff] }
 0x296   :  { %v1193_v22 = vpop.f32.mrb[12].mxu1 }
 0x297   :  { %v1194_v0 = vadd.f32 %v2318_v16, %v1193_v22  ;;  %v2466_v28 = vpop.f32.mrb[13].mxu1  ;;  %v2885_v22 = vpack.c.bf16 %v1898_v10, %v1896_v7  ;;  %v1998_v7 = vld [vmem:[%s4435_s11 + $0x10] sm:$0xff]  ;;  %v1999_v10 = vld [vmem:[%s4435_s11 + $0x18] sm:$0xff] }
 0x298   :  { %v1478_v50 = vpop.f32.mrb[12].mxu0  ;;  %v1897_v28 = vld [vmem:[%s4433_s9 + $0x50] sm:$0xff] }
 0x299   :  { %v1484_v15 = vmul.f32 %v1194_v0, %v1194_v0  ;;  %v1479_v53 = vadd.f32 %v2370_v47, %v1478_v50  ;;  %v2501_v38 = vpop.f32.mrb[13].mxu0  ;;  %v1493_v33 = vsub.f32 %v3825_v3, %v1194_v0  ;;  %v1891_v47 = vld [vmem:[%s4433_s9 + $0x20] sm:$0xff] }
 0x29a   :  { %v2883_v36 = vpack.c.bf16 %v1893_v26, %v1891_v47  ;;  %v1895_v0 = vld [vmem:[%s4433_s9 + $0x40] sm:$0xff]  ;;  %v2861_v38 = vpack.c.bf16 %v1799_v42, %v1797_v39 }
 0x29b   :  { %v1487_v55 = vsub.f32 %v1479_v53, %v1484_v15  ;;  %v2859_v15 = vpack.c.bf16 %v1794_v5, %v1792_v43  ;;  %v1796_v50 = vld [vmem:[%s4432_s8 + $0x40] sm:$0xff]  ;;  %v1900_v53 = vld [vmem:[%s4433_s9 + $0x68] sm:$0xff] }
 0x29c   :  { %v1997_v5 = vld [vmem:[%s4435_s11 + $0x8] sm:$0xff] }
 0x29d   :  { %v1490_v8 = vmax.f32 %v1487_v55, 0.0  ;;  %v1798_v55 = vld [vmem:[%s4432_s8 + $0x50] sm:$0xff] }
 0x29f   :  { %v1496_v61 = vadd.f32 1e-05, %v1490_v8  ;;  %v2887_v8 = vpack.c.bf16 %v1897_v28, %v1895_v0  ;;  %v2000_v0 = vld [vmem:[%s4435_s11 + $0x20] sm:$0xff]  ;;  %v2001_v28 = vld [vmem:[%s4435_s11 + $0x28] sm:$0xff] }
 0x2a1   :  { %3086 = vrsqrt.f32 %v1496_v61  ;;  %v1801_v61 = vld [vmem:[%s4432_s8 + $0x68] sm:$0xff] }
 0x2ab   :  { %v3087_v4 = vpop.eup %3086 }
 0x2ac   :  { %v1502_v62 = vmul.f32 %v3087_v4, %v1493_v33  ;;  %v1902_v33 = vld [vmem:[%s4433_s9 + $0x78] sm:$0xff] }
 0x2ad   :  { %v1803_v4 = vld [vmem:[%s4432_s8 + $0x78] sm:$0xff] }
 0x2ae   :  { %v1505_v13 = vmax.f32 %v1502_v62, 0.0  ;;  %v2889_v62 = vpack.c.bf16 %v1902_v33, %v1900_v53  ;;  %v2003_v53 = vld [vmem:[%s4435_s11 + $0x38] sm:$0xff]  ;;  %v2006_v33 = vld [vmem:[%s4435_s11 + $0x50] sm:$0xff] }
 0x2b0   :  { %v1508_v51 = vpack.c.bf16 %v1505_v13, %v1505_v13  ;;  %v1899_v13 = vld [vmem:[%s4433_s9 + $0x60] sm:$0xff] }
 0x2b2   :  { %2519 = vmatmul.mubr.bf16.vlgmr.msra.gmra.mrb[16].mxu1 %v1508_v51  ;;  %v1901_v51 = vld [vmem:[%s4433_s9 + $0x70] sm:$0xff] }
 0x2b3   :  { %1975 = vmatprep.mubr.f32.mxu1 %v4455_v1  ;;  %2880 = vmatpush1.bf16.msra.mxu1 %v2879_v46  ;;  %v2899_v46 = vpack.c.bf16 %v1909_v45, %v1907_v41  ;;  %v1992_v41 = vld [vmem:[%s4434_s10 + $0x40] sm:$0xff]  ;;  %v1993_v45 = vld [vmem:[%s4434_s10 + $0x48] sm:$0xff] }
 0x2b4   :  { %2882 = vmatprep.subr.bf16.mxu1 %v2881_v35  ;;  %v2255_v35 = vld [vmem:[%s4431_s7] ss:$0 sm:$0xff] }
 0x2b7   :  { %2884 = vmatpush1.bf16.msra.mxu1 %v2883_v36 }
 0x2b8   :  { %2886 = vmatprep.subr.bf16.mxu1 %v2885_v22  ;;  %v2905_v22 = vpack.c.bf16 %v1999_v10, %v1998_v7 }
 0x2bb   :  { %2888 = vmatpush1.bf16.msra.mxu1 %v2887_v8  ;;  %v2005_v8 = vld [vmem:[%s4435_s11 + $0x48] sm:$0xff] }
 0x2bc   :  { %2890 = vmatprep.subr.bf16.mxu1 %v2889_v62 }
 0x2f6   :  { %v1337_v24 = vpop.f32.mrb[14].mxu1 }
 0x2f7   :  { %v1485_v30 = vsub.f32 %v1337_v24, %v1482_v19  ;;  %v1339_v31 = vpop.f32.mrb[15].mxu1  ;;  %v2863_v19 = vpack.c.bf16 %v1798_v55, %v1796_v50  ;;  %v2865_v24 = vpack.c.bf16 %v1803_v4, %v1801_v61  ;;  %v2002_v50 = vld [vmem:[%s4435_s11 + $0x30] sm:$0xff]  ;;  %v2004_v55 = vld [vmem:[%s4435_s11 + $0x40] sm:$0xff]  ;;  %v2007_v4 = vld [vmem:[%s4435_s11 + $0x58] sm:$0xff] }
 0x2f8   :  { %v1486_v34 = vsub.f32 %v1339_v31, %v1483_v25  ;;  %v1800_v25 = vld [vmem:[%s4432_s8 + $0x60] sm:$0xff]  ;;  %v2891_v31 = vpack.c.bf16 %v1901_v51, %v1899_v13  ;;  %v2914_v61 = vpack.c.bf16 %v2005_v8, %v2004_v55  ;;  %v2917_v62 = vpack.c.bf16 %v2007_v4, %v2006_v33  ;;  %v2009_v51 = vld [vmem:[%s4435_s11 + $0x68] sm:$0xff] }
 0x2f9   :  { %v1488_v37 = vmax.f32 %v1485_v30, 0.0  ;;  %v1802_v30 = vld [vmem:[%s4432_s8 + $0x70] sm:$0xff]  ;;  %v2008_v13 = vld [vmem:[%s4435_s11 + $0x60] sm:$0xff] }
 0x2fa   :  { %v1489_v40 = vmax.f32 %v1486_v34, 0.0  ;;  %v2867_v34 = vpack.c.bf16 %v1802_v30, %v1800_v25  ;;  %2892 = vmatpush1.bf16.msra.mxu1 %v2891_v31  ;;  %v2011_v25 = vld [vmem:[%s4435_s11 + $0x78] sm:$0xff]  ;;  %v2012_v31 = vld [vmem:[%s4435_s11 + $0x80] sm:$0xff] }
 0x2fb   :  { %v1494_v3 = vadd.f32 1e-05, %v1488_v37  ;;  %v1805_v37 = vld [vmem:[%s4432_s8 + $0x88] sm:$0xff] }
 0x2fc   :  { %v1495_v44 = vadd.f32 1e-05, %v1489_v40  ;;  %v1807_v40 = vld [vmem:[%s4432_s8 + $0x98] sm:$0xff] }
 0x2fd   :  { %3088 = vrsqrt.f32 %v1494_v3  ;;  %v1904_v3 = vld [vmem:[%s4433_s9 + $0x88] sm:$0xff] }
 0x2fe   :  { %3090 = vrsqrt.f32 %v1495_v44  ;;  %v2869_v44 = vpack.c.bf16 %v1807_v40, %v1805_v37  ;;  %v2014_v40 = vld [vmem:[%s4435_s11 + $0x90] sm:$0xff] }
 0x307   :  { %v3089_v49 = vpop.eup %3088 }
 0x308   :  { %v3091_v58 = vpop.eup %3090  ;;  %v1500_v60 = vmul.f32 %v3089_v49, %v1491_v48  ;;  %v1906_v48 = vld [vmem:[%s4433_s9 + $0x98] sm:$0xff]  ;;  %v1804_v49 = vld [vmem:[%s4432_s8 + $0x80] sm:$0xff] }
 0x309   :  { %v1501_v2 = vmul.f32 %v3091_v58, %v1492_v54  ;;  %v1806_v54 = vld [vmem:[%s4432_s8 + $0x90] sm:$0xff]  ;;  %v2893_v58 = vpack.c.bf16 %v1906_v48, %v1904_v3  ;;  %v2015_v3 = vld [vmem:[%s4435_s11 + $0x98] sm:$0xff]  ;;  %v1984_v48 = vld [vmem:[%s4434_s10] sm:$0xff] }
 0x30a   :  { %v1503_v52 = vmax.f32 %v1500_v60, 0.0  ;;  %v2871_v60 = vpack.c.bf16 %v1806_v54, %v1804_v49  ;;  %v1985_v49 = vld [vmem:[%s4434_s10 + $0x8] sm:$0xff] }
 0x30b   :  { %v1504_v23 = vmax.f32 %v1501_v2, 0.0  ;;  %v1903_v2 = vld [vmem:[%s4433_s9 + $0x80] sm:$0xff]  ;;  %2894 = vmatprep.subr.bf16.mxu1 %v2893_v58 }
 0x30c   :  { %v1506_v56 = vpack.c.bf16 %v1503_v52, %v1503_v52  ;;  %v2895_v9 = vpack.c.bf16 %v1905_v6, %v1903_v2  ;;  %v1811_v52 = vld [vmem:[%s4432_s8 + $0xb8] sm:$0xff] }
 0x30d   :  { %v1507_v16 = vpack.c.bf16 %v1504_v23, %v1504_v23  ;;  %v2873_v17 = vpack.c.bf16 %v1811_v52, %v1809_v11  ;;  %v1810_v23 = vld [vmem:[%s4432_s8 + $0xb0] sm:$0xff]  ;;  %v2932_v11 = vpack.c.bf16 %v1985_v49, %v1984_v48 }
 0x30e   :  { %2896 = vmatpush1.bf16.msra.mxu1 %v2895_v9  ;;  %v2875_v29 = vpack.c.bf16 %v1810_v23, %v1808_v21  ;;  %v1986_v52 = vld [vmem:[%s4434_s10 + $0x10] sm:$0xff]  ;;  %v1989_v21 = vld [vmem:[%s4434_s10 + $0x28] sm:$0xff] }
 0x30f   :  { %1740 = vmatprep.mubr.bf16.mxu0 %v1507_v16  ;;  %2898 = vmatprep.subr.bf16.mxu1 %v2897_v27  ;;  %v2938_v23 = vpack.c.bf16 %v1989_v21, %v1988_v20  ;;  %v1990_v27 = vld [vmem:[%s4434_s10 + $0x30] sm:$0xff] }
 0x310   :  { %1741 = vmatmul.mubr.bf16.vlgmr.msra.gmra.mrb[16].mxu0 %v1506_v56 }
 0x311   :  { %2856 = vmatpush1.bf16.msra.mxu0 %v2855_v32  ;;  %1880 = vmatprep.mubr.f32.mxu0 %v4455_v1 }
 0x312   :  { %2858 = vmatprep.subr.bf16.mxu0 %v2857_v59  ;;  %2900 = vmatpush1.bf16.msra.mxu1 %v2899_v46  ;;  %v1996_v59 = vld [vmem:[%s4435_s11] sm:$0xff]  ;;  %v2944_v46 = vpack.c.bf16 %v1993_v45, %v1992_v41 }
 0x313   :  { %v2902_v36 = vpack.c.bf16 %v1997_v5, %v1996_v59 }
 0x315   :  { %2860 = vmatpush1.bf16.msra.mxu0 %v2859_v15  ;;  %v2908_v15 = vpack.c.bf16 %v2001_v28, %v2000_v0 }
 0x316   :  { %2862 = vmatprep.subr.bf16.mxu0 %v2861_v38  ;;  %v2911_v38 = vpack.c.bf16 %v2003_v53, %v2002_v50 }
 0x319   :  { %2864 = vmatpush1.bf16.msra.mxu0 %v2863_v19  ;;  %v2920_v19 = vpack.c.bf16 %v2009_v51, %v2008_v13 }
 0x31a   :  { %2866 = vmatprep.subr.bf16.mxu0 %v2865_v24  ;;  %v2010_v24 = vld [vmem:[%s4435_s11 + $0x70] sm:$0xff] }
 0x31b   :  { %v2923_v30 = vpack.c.bf16 %v2011_v25, %v2010_v24 }
 0x31d   :  { %2868 = vmatpush1.bf16.msra.mxu0 %v2867_v34  ;;  %v2013_v34 = vld [vmem:[%s4435_s11 + $0x88] sm:$0xff] }
 0x31e   :  { %2870 = vmatprep.subr.bf16.mxu0 %v2869_v44  ;;  %v2926_v37 = vpack.c.bf16 %v2013_v34, %v2012_v31  ;;  %v2929_v44 = vpack.c.bf16 %v2015_v3, %v2014_v40 }
 0x321   :  { %2872 = vmatpush1.bf16.msra.mxu0 %v2871_v60 }
 0x322   :  { %2874 = vmatprep.subr.bf16.mxu0 %v2873_v17  ;;  %v2935_v17 = vpack.c.bf16 %v1987_v14, %v1986_v52 }
 0x325   :  { %2876 = vmatpush1.bf16.msra.mxu0 %v2875_v29 }
 0x326   :  { %2901 = vmatprep.subr.bf16.mxu0 %v3218_v18 }
 0x385   :  { %v1782_v57 = vpop.f32.mrb[16].mxu1 }
 0x386   :  { %v2520_v63 = vpop.f32.mrb[17].mxu1 }
 0x387   :  { %v1785_v12 = vpop.f32.mrb[18].mxu1  ;;  %v1995_v63 = vld [vmem:[%s4434_s10 + $0x58] sm:$0xff] }
 0x388   :  { %v2521_v16 = vpop.f32.mrb[19].mxu1 }
 0x3e3   :  { %v2404_v32 = vpop.f32.mrb[16].mxu0 }
 0x3e4   :  { %v2405_v43 = vpop.f32.mrb[17].mxu0 }
 0x3e5   :  { %v2406_v47 = vadd.f32 %v2405_v43, %v2404_v32  ;;  %v2407_v56 = vpop.f32.mrb[18].mxu0 }
 0x3e6   :  { %v2408_v26 = vpop.f32.mrb[19].mxu0 }
 0x3e7   :  { %v1743_v39 = vadd.f32 %v2406_v47, %v2255_v35 }
 0x3e9   :  { %v4297_v42 = vadd.f32 %v1782_v57, %v1743_v39  ;;  %v1994_v57 = vld [vmem:[%s4434_s10 + $0x50] sm:$0xff] }
 0x3ea   :  { %v2947_v12 = vpack.c.bf16 %v1995_v63, %v1994_v57 }
 0x3eb   :  { %2280 = vmatmul.mubr.msk.f32.vlgmr.msra.gmra.mrb[14].mxu0 %vm1812_vm2, %v4297_v42  ;;  %2281 = vmatmul.mubr.msk.f32.vlgmr.msra.gmra.mrb[20].mxu1 %vm1812_vm2, %v4297_v42 }
 0x3ec   :  { %2903 = vmatpush1.bf16.msra.mxu0 %v2902_v36 }
 0x3ed   :  { %2904 = vmatprep.subr.bf16.mxu0 %v3218_v18 }
 0x3f0   :  { %2906 = vmatpush1.bf16.msra.mxu0 %v2905_v22 }
 0x3f1   :  { %2907 = vmatprep.subr.bf16.mxu0 %v3218_v18 }
 0x3f4   :  { %2909 = vmatpush1.bf16.msra.mxu0 %v2908_v15 }
 0x3f5   :  { %2910 = vmatprep.subr.bf16.mxu0 %v3218_v18 }
 0x3f8   :  { %2912 = vmatpush1.bf16.msra.mxu0 %v2911_v38 }
 0x3f9   :  { %2913 = vmatprep.subr.bf16.mxu0 %v3218_v18 }
 0x3fc   :  { %2915 = vmatpush1.bf16.msra.mxu0 %v2914_v61 }
 0x3fd   :  { %2916 = vmatprep.subr.bf16.mxu0 %v3218_v18 }
 0x400   :  { %2918 = vmatpush1.bf16.msra.mxu0 %v2917_v62 }
 0x401   :  { %2919 = vmatprep.subr.bf16.mxu0 %v3218_v18 }
 0x404   :  { %2921 = vmatpush1.bf16.msra.mxu0 %v2920_v19 }
 0x405   :  { %2922 = vmatprep.subr.bf16.mxu0 %v3218_v18 }
 0x408   :  { %2924 = vmatpush1.bf16.msra.mxu0 %v2923_v30 }
 0x409   :  { %2925 = vmatprep.subr.bf16.mxu0 %v3218_v18 }
 0x40c   :  { %2927 = vmatpush1.bf16.msra.mxu0 %v2926_v37 }
 0x40d   :  { %2928 = vmatprep.subr.bf16.mxu0 %v3218_v18 }
 0x410   :  { %2930 = vmatpush1.bf16.msra.mxu0 %v2929_v44 }
 0x411   :  { %2931 = vmatprep.subr.bf16.mxu0 %v3218_v18 }
 0x4be   :  { %v1882_v54 = vpop.f32.mrb[14].mxu0  ;;  %v1977_v58 = vpop.f32.mrb[20].mxu1 }
 0x4bf   :  { %v1982_v60 = vmin.f32 %v1882_v54, %v1977_v58  ;;  %v1884_v2 = vpop.f32.mrb[15].mxu0  ;;  %v1979_v6 = vpop.f32.mrb[21].mxu1 }
 0x4c0   :  { %v1983_v9 = vmin.f32 %v1884_v2, %v1979_v6 }
 0x4c2   :  { %2282 = vmatprep.mubr.msk.f32.mxu0 %vm2016_vm3, %v1983_v9 }
 0x4c3   :  { %2085 = vmatmul.mubr.f32.vlgmr.msra.gmra.mrb[20].mxu0 %v1982_v60 }
 0x4c4   :  { %2933 = vmatpush3.bf16.msra.mxu0 %v2932_v11  ;;  %2546 = vmatprep.mubr.msk.f32.mxu0 %vm3219_vm1, %v4455_v1  ;;  %v1991_v1 = vld [vmem:[%s4434_s10 + $0x38] sm:$0xff] }
 0x4c5   :  { %2934 = vmatprep.subr.bf16.mxu0 %v3218_v18  ;;  %v2941_v29 = vpack.c.bf16 %v1991_v1, %v1990_v27 }
 0x4c8   :  { %2936 = vmatpush3.bf16.msra.mxu0 %v2935_v17 }
 0x4c9   :  { %2937 = vmatprep.subr.bf16.mxu0 %v3218_v18 }
 0x4cc   :  { %2939 = vmatpush3.bf16.msra.mxu0 %v2938_v23 }
 0x4cd   :  { %2940 = vmatprep.subr.bf16.mxu0 %v3218_v18 }
 0x4d0   :  { %2942 = vmatpush3.bf16.msra.mxu0 %v2941_v29 }
 0x4d1   :  { %2943 = vmatprep.subr.bf16.mxu0 %v3218_v18 }
 0x4d4   :  { %2945 = vmatpush3.bf16.msra.mxu0 %v2944_v46 }
 0x4d5   :  { %2946 = vmatprep.subr.bf16.mxu0 %v3218_v18 }
 0x4d8   :  { %2948 = vmatpush3.bf16.msra.mxu0 %v2947_v12 }
 0x4db   :  { %2547 = vmatmul.mubr.msk.f32.vlgmr.msra.gmra.mrb[20].mxu0 %vm1812_vm2, %v4297_v42 }
 0x5ae   :  { %v2156_v16 = vpop.f32.mrb[20].mxu0 }
 0x5af   :  { %v2548_v32 = vpop.f32.mrb[21].mxu0  ;;  %2161 = vst.msk [vmem:[#allocation10] sm:$0xff] %vm2160_vm4, %v2156_v16 }
 0x5b0   :  { %3191 = shalt.err (!%p3188_p8)
}
 0x5b1   :  { %s3192_s3 = scalar_lea.hbm %s4436_s12, 128 }
 0x5b2   :  { %p3193_p9 = scmp.ne.s32.totalorder %s4436_s12, %s3192_s3  ;;  %p3196_p10 = scmp.lt.u32.totalorder %s3192_s3, %s4436_s12 }
 0x5b4   :  { %p3198_p11 = pnand %p3196_p10, %p3193_p9 }
 0x5b6   :  { %3201 = shalt.err (!%p3198_p11)
}
 0x5b7   :  { %2171 = dma.vmem_to_hbm [thread:$0]  %s2169_s30, 128, %s4436_s12, [#allocation4]  }
 0x5b8   :  { %3208 = dma.done.wait [#allocation4], 128  }
 0x5b9   :  { %3209 = vsyncadd [#allocation4], 4294967168 }
 0x5ba   :  { %2175 = vsyncpa [#allocation3], 1 }
 0x5bb   :  { %2176 = vsyncpa [#allocation6], 1 }
 0x5bc   :  { %2177 = vsyncpa [#allocation9], 1 }
 0x5bd   :  { %2178 = vsyncpa [#allocation4], 1 }

</bundles_post_ra>
